<compile_context>
chip_gen: v7x
topology: tpu7x:2x2x1
jax: 0.10.0
libtpu: 0.0.40
codegen_flags: <defaults>
</compile_context>

<pallas_src>
import jax
import jax.numpy as jnp
from jax.experimental import pallas as pl
from jax.experimental.pallas import tpu as pltpu


# ---------------------------------------------------------------------------
# Fused kernel: GCN encoder (once, at grid step 0) + inner-product decoder
# (one adj row-tile per grid step, reading Z from persistent VMEM scratch).
# ---------------------------------------------------------------------------
def _gcnae_fused_kernel(a_hat_ref, x_ref, w1_ref, b1_ref, w2_ref, b2_ref,
                        we_ref, be_ref, adj_ref, z_ref, z_bf16_ref):
    f32 = jnp.float32
    bf16 = jnp.bfloat16
    step = pl.program_id(0)
    tm = adj_ref.shape[0]          # adj rows handled this step (static)

    # ---- encoder path: runs once, result persists in z_ref / z_bf16_ref ----
    @pl.when(step == 0)
    def _encoder():
        a_hat = a_hat_ref[...]                                        # bf16

        # layer 1: relu(A_hat @ (X @ W1) + b1)
        xw = jnp.dot(x_ref[...], w1_ref[...], preferred_element_type=f32)
        h = jnp.dot(a_hat, xw.astype(bf16), preferred_element_type=f32)
        h = jnp.maximum(h + b1_ref[...], 0.0)

        # layer 2: relu(A_hat @ (H @ W2) + b2)
        hw = jnp.dot(h.astype(bf16), w2_ref[...], preferred_element_type=f32)
        h = jnp.dot(a_hat, hw.astype(bf16), preferred_element_type=f32)
        h = jnp.maximum(h + b2_ref[...], 0.0)

        # encoder: Linear(hidden_dim, hidden_1) + ReLU   (hidden_bn=False)
        z = jnp.dot(h.astype(bf16), we_ref[...], preferred_element_type=f32)
        z = jnp.maximum(z + be_ref[...], 0.0)

        z_ref[...] = z                       # grid-invariant output block
        z_bf16_ref[...] = z.astype(bf16)     # persistent decoder operand

    # ---- decoder: adj[rows, :] = Z[rows] @ Z.T (transpose folded into MXU) ----
    row0 = pl.multiple_of(step * tm, tm)
    z_rows = z_bf16_ref[pl.ds(row0, tm), :]
    adj_ref[...] = jax.lax.dot_general(
        z_rows, z_bf16_ref[...],
        dimension_numbers=(((1,), (1,)), ((), ())),   # contract feature dim of both
        preferred_element_type=f32,
    )


def gcnae_fused(a_hat, x, w1, b1, w2, b2, we, be, *, row_tile=None):
    """(adj_rec, z) in a single fused pallas_call."""
    f32 = jnp.float32
    bf16 = jnp.bfloat16

    n, in_feats = x.shape
    hidden_dim = w1.shape[1]
    hidden_1 = we.shape[1]

    # bf16 MXU operands (f32 accumulation inside the kernel); biases stay f32.
    a_hat_b = a_hat.astype(bf16)
    x_b = x.astype(bf16)
    w1_b = w1.astype(bf16)
    w2_b = w2.astype(bf16)
    we_b = we.astype(bf16)
    b1_2d = b1.reshape(1, -1).astype(f32)
    b2_2d = b2.reshape(1, -1).astype(f32)
    be_2d = be.reshape(1, -1).astype(f32)

    # Decoder row tile: one big tile for small graphs (per-step overhead dominates
    # on 1-TC chips and the fused axis is "arbitrary" anyway); cap at 512 rows per
    # step at scale (adj output is the memory-bound part).
    if row_tile is None:
        row_tile = n if n <= 512 else 512
    if n % row_tile != 0 or row_tile % 8 != 0:
        row_tile = n                  # full-dim block is always legal
    grid = (n // row_tile,)

    in_specs = [
        pl.BlockSpec((n, n), lambda i: (0, 0)),                    # A_hat (invariant)
        pl.BlockSpec((n, in_feats), lambda i: (0, 0)),             # X
        pl.BlockSpec((in_feats, hidden_dim), lambda i: (0, 0)),    # W1
        pl.BlockSpec((1, hidden_dim), lambda i: (0, 0)),           # b1
        pl.BlockSpec((hidden_dim, hidden_dim), lambda i: (0, 0)),  # W2
        pl.BlockSpec((1, hidden_dim), lambda i: (0, 0)),           # b2
        pl.BlockSpec((hidden_dim, hidden_1), lambda i: (0, 0)),    # We
        pl.BlockSpec((1, hidden_1), lambda i: (0, 0)),             # be
    ]
    out_specs = (
        pl.BlockSpec((row_tile, n), lambda i: (i, 0)),   # adj row-tile (lane-dense)
        pl.BlockSpec((n, hidden_1), lambda i: (0, 0)),   # z (grid-invariant, written at step 0)
    )
    out_shape = (
        jax.ShapeDtypeStruct((n, n), f32),
        jax.ShapeDtypeStruct((n, hidden_1), f32),
    )

    adj, z = pl.pallas_call(
        _gcnae_fused_kernel,
        out_shape=out_shape,
        grid_spec=pltpu.PrefetchScalarGridSpec(
            num_scalar_prefetch=0,
            grid=grid,
            in_specs=in_specs,
            out_specs=out_specs,
            scratch_shapes=[pltpu.VMEM((n, hidden_1), bf16)],   # persistent Z operand
        ),
        compiler_params=pltpu.CompilerParams(
            # adj steps depend on the Z scratch written at step 0 -> "arbitrary".
            dimension_semantics=("arbitrary",),
            vmem_limit_bytes=32 * 1024 * 1024,
        ),
    )(a_hat_b, x_b, w1_b, b1_2d, w2_b, b2_2d, we_b, be_2d)
    return adj, z


# ---------------------------------------------------------------------------
# GCNAE forward (one jit, one pallas_call)
# ---------------------------------------------------------------------------
@jax.jit
def gcnae_forward(a_hat, features, params):
    # block loop (both blocks = full graph here); dropout == None (p=0)
    adj_rec, z = gcnae_fused(a_hat, features,
                             params["w1"], params["b1"],
                             params["w2"], params["b2"],
                             params["we"], params["be"])
    return adj_rec, z


# ---------------------------------------------------------------------------
# Host-side graph / parameter construction
# ---------------------------------------------------------------------------
def build_normalized_adjacency(key, n_nodes, edge_prob=0.15):
    """Build weighted adjacency A[dst, src] with symmetric degree norm folded in.

    A_hat = D_in^{-1/2} @ A @ D_out^{-1/2}; degrees = edge counts, clamped >= 1.
    """
    k1, k2 = jax.random.split(key)
    mask = (jax.random.uniform(k1, (n_nodes, n_nodes)) < edge_prob).astype(jnp.float32)
    # ensure self loops so no node has zero in/out degree (mirrors add_self_loop)
    mask = jnp.maximum(mask, jnp.eye(n_nodes, dtype=jnp.float32))
    weights = jax.random.uniform(k2, (n_nodes, n_nodes), minval=0.1, maxval=1.0)
    adj = mask * weights                                 # A[dst, src]

    in_deg = jnp.maximum(mask.sum(axis=1), 1.0)          # per dst (row sums)
    out_deg = jnp.maximum(mask.sum(axis=0), 1.0)         # per src (col sums)
    a_hat = (in_deg ** -0.5)[:, None] * adj * (out_deg ** -0.5)[None, :]
    return a_hat


def init_params(key, in_feats, hidden_dim, hidden_1):
    ks = jax.random.split(key, 3)

    def glorot(k, shape):
        lim = jnp.sqrt(6.0 / (shape[0] + shape[1]))
        return jax.random.uniform(k, shape, minval=-lim, maxval=lim, dtype=jnp.float32)

    return {
        "w1": glorot(ks[0], (in_feats, hidden_dim)),
        "b1": jnp.zeros((hidden_dim,), jnp.float32),
        "w2": glorot(ks[1], (hidden_dim, hidden_dim)),
        "b2": jnp.zeros((hidden_dim,), jnp.float32),
        "we": glorot(ks[2], (hidden_dim, hidden_1)),
        "be": jnp.zeros((hidden_1,), jnp.float32),
    }


def reference_forward(a_hat, x, params):
    """Pure-JAX f32 reference of the same math (highest precision), for validation."""
    hp = jax.lax.Precision.HIGHEST

    def gconv(x, w, b):
        xw = jnp.dot(x, w, precision=hp)
        return jnp.maximum(jnp.dot(a_hat, xw, precision=hp) + b, 0.0)

    h = gconv(x, params["w1"], params["b1"])
    h = gconv(h, params["w2"], params["b2"])
    z = jnp.maximum(jnp.dot(h, params["we"], precision=hp) + params["be"], 0.0)
    adj = jnp.dot(z, z.T, precision=hp)
    return adj, z


if __name__ == "__main__":
    # small, tile-friendly shapes
    N_NODES = 256
    IN_FEATS = 256
    HIDDEN_DIM = 128
    HIDDEN_1 = 128

    root = jax.random.PRNGKey(0)
    k_graph, k_feat, k_param = jax.random.split(root, 3)

    a_hat = build_normalized_adjacency(k_graph, N_NODES)
    features = jax.random.normal(k_feat, (N_NODES, IN_FEATS), dtype=jnp.float32)
    params = init_params(k_param, IN_FEATS, HIDDEN_DIM, HIDDEN_1)

    adj_rec, emb = gcnae_forward(a_hat, features, params)
    adj_rec = jax.block_until_ready(adj_rec)
    emb = jax.block_until_ready(emb)

    assert adj_rec.shape == (N_NODES, N_NODES)
    assert emb.shape == (N_NODES, HIDDEN_1)

    # sanity-check against a pure-JAX f32 reference (bf16 MXU operands in-kernel)
    ref_adj, ref_emb = reference_forward(a_hat, features, params)
    assert bool(jnp.allclose(emb, ref_emb, rtol=1e-2, atol=1e-2))
    assert bool(jnp.allclose(adj_rec, ref_adj, rtol=1e-2, atol=1e-2))

    print("KERNEL_OK")
</pallas_src>

<mosaic_0001>
module attributes {stable_mosaic.version = 11 : i64} {
  func.func @_gcnae_fused_kernel(%arg0: i32, %arg1: memref<256x256xbf16, #tpu.memory_space<vmem>>, %arg2: memref<256x256xbf16, #tpu.memory_space<vmem>>, %arg3: memref<256x128xbf16, #tpu.memory_space<vmem>>, %arg4: memref<1x128xf32, #tpu.memory_space<vmem>>, %arg5: memref<128x128xbf16, #tpu.memory_space<vmem>>, %arg6: memref<1x128xf32, #tpu.memory_space<vmem>>, %arg7: memref<128x128xbf16, #tpu.memory_space<vmem>>, %arg8: memref<1x128xf32, #tpu.memory_space<vmem>>, %arg9: memref<256x256xf32, #tpu.memory_space<vmem>>, %arg10: memref<256x128xf32, #tpu.memory_space<vmem>>, %arg11: memref<256x128xbf16, #tpu.memory_space<vmem>>) attributes {dimension_semantics = [#tpu.dimension_semantics<arbitrary>], iteration_bounds = array<i64: 1>, scalar_prefetch = 0 : i64, scratch_operands = 1 : i64, tpu.core_type = #tpu.core_type<tc>, window_params = [{pipeline_mode = #tpu.pipeline_mode<synchronous>, transform_indices = @transform_0, window_bounds = array<i64: 256, 256>}, {pipeline_mode = #tpu.pipeline_mode<synchronous>, transform_indices = @transform_1, window_bounds = array<i64: 256, 256>}, {pipeline_mode = #tpu.pipeline_mode<synchronous>, transform_indices = @transform_2, window_bounds = array<i64: 256, 128>}, {pipeline_mode = #tpu.pipeline_mode<synchronous>, transform_indices = @transform_3, window_bounds = array<i64: 1, 128>}, {pipeline_mode = #tpu.pipeline_mode<synchronous>, transform_indices = @transform_4, window_bounds = array<i64: 128, 128>}, {pipeline_mode = #tpu.pipeline_mode<synchronous>, transform_indices = @transform_5, window_bounds = array<i64: 1, 128>}, {pipeline_mode = #tpu.pipeline_mode<synchronous>, transform_indices = @transform_6, window_bounds = array<i64: 128, 128>}, {pipeline_mode = #tpu.pipeline_mode<synchronous>, transform_indices = @transform_7, window_bounds = array<i64: 1, 128>}, {transform_indices = @transform_8, window_bounds = array<i64: 256, 256>}, {pipeline_mode = #tpu.pipeline_mode<synchronous>, transform_indices = @transform_9, window_bounds = array<i64: 256, 128>}]} {
    %c0_i32 = arith.constant 0 : i32
    %0 = arith.cmpi eq, %arg0, %c0_i32 : i32
    %1 = arith.extui %0 : i1 to i32
    %c0_i32_0 = arith.constant 0 : i32
    %2 = arith.cmpi ne, %1, %c0_i32_0 : i32
    scf.if %2 {
      %c0_5 = arith.constant 0 : index
      %c0_6 = arith.constant 0 : index
      %10 = vector.load %arg1[%c0_5, %c0_6] : memref<256x256xbf16, #tpu.memory_space<vmem>>, vector<256x256xbf16>
      %c0_7 = arith.constant 0 : index
      %c0_8 = arith.constant 0 : index
      %11 = vector.load %arg2[%c0_7, %c0_8] : memref<256x256xbf16, #tpu.memory_space<vmem>>, vector<256x256xbf16>
      %c0_9 = arith.constant 0 : index
      %c0_10 = arith.constant 0 : index
      %12 = vector.load %arg3[%c0_9, %c0_10] : memref<256x128xbf16, #tpu.memory_space<vmem>>, vector<256x128xbf16>
      %cst_11 = arith.constant dense<0.000000e+00> : vector<256x128xf32>
      %13 = tpu.matmul %11, %12, %cst_11 {dimension_numbers = #tpu.dot_dimension_numbers<[1], [0], [0], [1], [0, 0, 1, 1], [], []>} : vector<256x256xbf16>, vector<256x128xbf16>, vector<256x128xf32> -> vector<256x128xf32>
      %14 = arith.truncf %13 : vector<256x128xf32> to vector<256x128xbf16>
      %cst_12 = arith.constant dense<0.000000e+00> : vector<256x128xf32>
      %15 = tpu.matmul %10, %14, %cst_12 {dimension_numbers = #tpu.dot_dimension_numbers<[1], [0], [0], [1], [0, 0, 1, 1], [], []>} : vector<256x256xbf16>, vector<256x128xbf16>, vector<256x128xf32> -> vector<256x128xf32>
      %c0_13 = arith.constant 0 : index
      %c0_14 = arith.constant 0 : index
      %16 = vector.load %arg4[%c0_13, %c0_14] : memref<1x128xf32, #tpu.memory_space<vmem>>, vector<1x128xf32>
      %17 = vector.broadcast %16 : vector<1x128xf32> to vector<256x128xf32>
      %18 = arith.addf %15, %17 : vector<256x128xf32>
      %cst_15 = arith.constant 0.000000e+00 : f32
      %19 = vector.broadcast %cst_15 : f32 to vector<256x128xf32>
      %20 = arith.maximumf %18, %19 : vector<256x128xf32>
      %21 = arith.truncf %20 : vector<256x128xf32> to vector<256x128xbf16>
      %c0_16 = arith.constant 0 : index
      %c0_17 = arith.constant 0 : index
      %22 = vector.load %arg5[%c0_16, %c0_17] : memref<128x128xbf16, #tpu.memory_space<vmem>>, vector<128x128xbf16>
      %cst_18 = arith.constant dense<0.000000e+00> : vector<256x128xf32>
      %23 = tpu.matmul %21, %22, %cst_18 {dimension_numbers = #tpu.dot_dimension_numbers<[1], [0], [0], [1], [0, 0, 1, 1], [], []>} : vector<256x128xbf16>, vector<128x128xbf16>, vector<256x128xf32> -> vector<256x128xf32>
      %24 = arith.truncf %23 : vector<256x128xf32> to vector<256x128xbf16>
      %cst_19 = arith.constant dense<0.000000e+00> : vector<256x128xf32>
      %25 = tpu.matmul %10, %24, %cst_19 {dimension_numbers = #tpu.dot_dimension_numbers<[1], [0], [0], [1], [0, 0, 1, 1], [], []>} : vector<256x256xbf16>, vector<256x128xbf16>, vector<256x128xf32> -> vector<256x128xf32>
      %c0_20 = arith.constant 0 : index
      %c0_21 = arith.constant 0 : index
      %26 = vector.load %arg6[%c0_20, %c0_21] : memref<1x128xf32, #tpu.memory_space<vmem>>, vector<1x128xf32>
      %27 = vector.broadcast %26 : vector<1x128xf32> to vector<256x128xf32>
      %28 = arith.addf %25, %27 : vector<256x128xf32>
      %cst_22 = arith.constant 0.000000e+00 : f32
      %29 = vector.broadcast %cst_22 : f32 to vector<256x128xf32>
      %30 = arith.maximumf %28, %29 : vector<256x128xf32>
      %31 = arith.truncf %30 : vector<256x128xf32> to vector<256x128xbf16>
      %c0_23 = arith.constant 0 : index
      %c0_24 = arith.constant 0 : index
      %32 = vector.load %arg7[%c0_23, %c0_24] : memref<128x128xbf16, #tpu.memory_space<vmem>>, vector<128x128xbf16>
      %cst_25 = arith.constant dense<0.000000e+00> : vector<256x128xf32>
      %33 = tpu.matmul %31, %32, %cst_25 {dimension_numbers = #tpu.dot_dimension_numbers<[1], [0], [0], [1], [0, 0, 1, 1], [], []>} : vector<256x128xbf16>, vector<128x128xbf16>, vector<256x128xf32> -> vector<256x128xf32>
      %c0_26 = arith.constant 0 : index
      %c0_27 = arith.constant 0 : index
      %34 = vector.load %arg8[%c0_26, %c0_27] : memref<1x128xf32, #tpu.memory_space<vmem>>, vector<1x128xf32>
      %35 = vector.broadcast %34 : vector<1x128xf32> to vector<256x128xf32>
      %36 = arith.addf %33, %35 : vector<256x128xf32>
      %cst_28 = arith.constant 0.000000e+00 : f32
      %37 = vector.broadcast %cst_28 : f32 to vector<256x128xf32>
      %38 = arith.maximumf %36, %37 : vector<256x128xf32>
      %c0_29 = arith.constant 0 : index
      %c0_30 = arith.constant 0 : index
      %39 = vector.load %arg10[%c0_29, %c0_30] : memref<256x128xf32, #tpu.memory_space<vmem>>, vector<256x128xf32>
      tpu.vector_store %arg10[%c0_29, %c0_30], %38 {strides = array<i32>} : memref<256x128xf32, #tpu.memory_space<vmem>>, vector<256x128xf32>,
      %40 = arith.truncf %38 : vector<256x128xf32> to vector<256x128xbf16>
      %c0_31 = arith.constant 0 : index
      %c0_32 = arith.constant 0 : index
      %41 = vector.load %arg11[%c0_31, %c0_32] : memref<256x128xbf16, #tpu.memory_space<vmem>>, vector<256x128xbf16>
      tpu.vector_store %arg11[%c0_31, %c0_32], %40 {strides = array<i32>} : memref<256x128xbf16, #tpu.memory_space<vmem>>, vector<256x128xbf16>,
    } else {
    }
    %c256_i32 = arith.constant 256 : i32
    %3 = arith.muli %arg0, %c256_i32 : i32
    %4 = tpu.assume_multiple %3, 256 : i32
    %5 = arith.index_cast %4 : i32 to index
    %c0 = arith.constant 0 : index
    %6 = vector.load %arg11[%5, %c0] : memref<256x128xbf16, #tpu.memory_space<vmem>>, vector<256x128xbf16>
    %c0_1 = arith.constant 0 : index
    %c0_2 = arith.constant 0 : index
    %7 = vector.load %arg11[%c0_1, %c0_2] : memref<256x128xbf16, #tpu.memory_space<vmem>>, vector<256x128xbf16>
    %cst = arith.constant dense<0.000000e+00> : vector<256x256xf32>
    %8 = tpu.matmul %6, %7, %cst {dimension_numbers = #tpu.dot_dimension_numbers<[1], [1], [0], [0], [0, 0, 1, 0], [], []>} : vector<256x128xbf16>, vector<256x128xbf16>, vector<256x256xf32> -> vector<256x256xf32>
    %c0_3 = arith.constant 0 : index
    %c0_4 = arith.constant 0 : index
    %9 = vector.load %arg9[%c0_3, %c0_4] : memref<256x256xf32, #tpu.memory_space<vmem>>, vector<256x256xf32>
    tpu.vector_store %arg9[%c0_3, %c0_4], %8 {strides = array<i32>} : memref<256x256xf32, #tpu.memory_space<vmem>>, vector<256x256xf32>,
    return
  }
  func.func @transform_0(%arg0: i32) -> (i32, i32) {
    %c0_i32 = arith.constant 0 : i32
    %c0_i32_0 = arith.constant 0 : i32
    %c0_i32_1 = arith.constant 0 : i32
    return %c0_i32, %c0_i32_0 : i32, i32
  }
  func.func @transform_1(%arg0: i32) -> (i32, i32) {
    %c0_i32 = arith.constant 0 : i32
    %c0_i32_0 = arith.constant 0 : i32
    %c0_i32_1 = arith.constant 0 : i32
    return %c0_i32, %c0_i32_0 : i32, i32
  }
  func.func @transform_2(%arg0: i32) -> (i32, i32) {
    %c0_i32 = arith.constant 0 : i32
    %c0_i32_0 = arith.constant 0 : i32
    %c0_i32_1 = arith.constant 0 : i32
    return %c0_i32, %c0_i32_0 : i32, i32
  }
  func.func @transform_3(%arg0: i32) -> (i32, i32) {
    %c0_i32 = arith.constant 0 : i32
    %c0_i32_0 = arith.constant 0 : i32
    %c0_i32_1 = arith.constant 0 : i32
    return %c0_i32, %c0_i32_0 : i32, i32
  }
  func.func @transform_4(%arg0: i32) -> (i32, i32) {
    %c0_i32 = arith.constant 0 : i32
    %c0_i32_0 = arith.constant 0 : i32
    %c0_i32_1 = arith.constant 0 : i32
    return %c0_i32, %c0_i32_0 : i32, i32
  }
  func.func @transform_5(%arg0: i32) -> (i32, i32) {
    %c0_i32 = arith.constant 0 : i32
    %c0_i32_0 = arith.constant 0 : i32
    %c0_i32_1 = arith.constant 0 : i32
    return %c0_i32, %c0_i32_0 : i32, i32
  }
  func.func @transform_6(%arg0: i32) -> (i32, i32) {
    %c0_i32 = arith.constant 0 : i32
    %c0_i32_0 = arith.constant 0 : i32
    %c0_i32_1 = arith.constant 0 : i32
    return %c0_i32, %c0_i32_0 : i32, i32
  }
  func.func @transform_7(%arg0: i32) -> (i32, i32) {
    %c0_i32 = arith.constant 0 : i32
    %c0_i32_0 = arith.constant 0 : i32
    %c0_i32_1 = arith.constant 0 : i32
    return %c0_i32, %c0_i32_0 : i32, i32
  }
  func.func @transform_8(%arg0: i32) -> (i32, i32) {
    %c0_i32 = arith.constant 0 : i32
    %c0_i32_0 = arith.constant 0 : i32
    return %arg0, %c0_i32 : i32, i32
  }
  func.func @transform_9(%arg0: i32) -> (i32, i32) {
    %c0_i32 = arith.constant 0 : i32
    %c0_i32_0 = arith.constant 0 : i32
    %c0_i32_1 = arith.constant 0 : i32
    return %c0_i32, %c0_i32_0 : i32, i32
  }
}

</mosaic_0001>

<bundles_post_ra>
// kernel: gcnae_forward.1
= control target key start
LH: loop header
LB: loop body
LE: loop exit
PB: predicated region body
PF: predicated region fallthrough
CT: control target
= control target key end

     0   :  { %15 = vsyncpa [#allocation4], 0  ;;  %s3548_s0 = inlined_call_operand.vmem [shape: bf16[256,256], index: 0, kind: input, shape index: {}]   ;;  %s3549_s1 = inlined_call_operand.vmem [shape: bf16[256,256], index: 1, kind: input, shape index: {}]   ;;  %s3550_s2 = inlined_call_operand.vmem [shape: bf16[256,128], index: 2, kind: input, shape index: {}]   ;;  %s3551_s3 = inlined_call_operand.vmem [shape: f32[1,128], index: 3, kind: input, shape index: {}]   ;;  %s3552_s4 = inlined_call_operand.vmem [shape: bf16[128,128], index: 4, kind: input, shape index: {}]   ;;  %s3553_s5 = inlined_call_operand.vmem [shape: f32[1,128], index: 5, kind: input, shape index: {}]   ;;  %s3554_s6 = inlined_call_operand.vmem [shape: bf16[128,128], index: 6, kind: input, shape index: {}]   ;;  %s3555_s7 = inlined_call_operand.vmem [shape: f32[1,128], index: 7, kind: input, shape index: {}]   ;;  %s3556_s8 = inlined_call_operand.hbm [shape: f32[256,256], index: 8, kind: output, shape index: {0}]   ;;  %s3557_s9 = inlined_call_operand.hbm [shape: f32[256,128], index: 9, kind: output, shape index: {1}]  }
   0x1   :  { %v2705_v0 = vld [vmem:[%s3550_s2 + $0x40] sm:$0xff]   ;;  %v2707_v2 = vld [vmem:[%s3550_s2 + $0x48] sm:$0xff]   ;;  %v2709_v4 = vld [vmem:[%s3550_s2 + $0x50] sm:$0xff]  }
   0x2   :  { %v2706_v1 = vld [vmem:[%s3550_s2] sm:$0xff]   ;;  %2155 = vmatprep.subr.bf16.mxu0 %v2705_v0  ;;  %2683 = vmatprep.subr.bf16.mxu1 %v2705_v0  ;;  %v2708_v3 = vld [vmem:[%s3550_s2 + $0x8] sm:$0xff]   ;;  %v2710_v5 = vld [vmem:[%s3550_s2 + $0x10] sm:$0xff]  }
   0x3   :  { %2156 = vmatpush3.bf16.msra.mxu0 %v2706_v1  ;;  %2691 = vmatpush3.bf16.msra.mxu1 %v2706_v1  ;;  %v2711_v6 = vld [vmem:[%s3550_s2 + $0x58] sm:$0xff]   ;;  %v2713_v8 = vld [vmem:[%s3550_s2 + $0x60] sm:$0xff]   ;;  %v2715_v10 = vld [vmem:[%s3550_s2 + $0x68] sm:$0xff]  }
   0x4   :  { %2157 = vmatprep.subr.bf16.mxu0 %v2707_v2  ;;  %2684 = vmatprep.subr.bf16.mxu1 %v2707_v2  ;;  %v2712_v7 = vld [vmem:[%s3550_s2 + $0x18] sm:$0xff]   ;;  %v2714_v9 = vld [vmem:[%s3550_s2 + $0x20] sm:$0xff]   ;;  %v2716_v13 = vld [vmem:[%s3550_s2 + $0x28] sm:$0xff]  }
   0x5   :  { %v2723_v11 = vld [vmem:[%s3549_s1 + $0x4] ss:$8 sps:$4 sm:$0xff]   ;;  %v2717_v14 = vld [vmem:[%s3550_s2 + $0x70] sm:$0xff]   ;;  %v2719_v16 = vld [vmem:[%s3550_s2 + $0x78] sm:$0xff]  }
   0x6   :  { %v2726_v12 = vld [vmem:[%s3549_s1 + $0x84] ss:$8 sps:$4 sm:$0xff]   ;;  %422 = vmatprep.mubr.bf16.mxu0 %v2723_v11  ;;  %v2718_v15 = vld [vmem:[%s3550_s2 + $0x30] sm:$0xff]   ;;  %v2720_v17 = vld [vmem:[%s3550_s2 + $0x38] sm:$0xff]  }
   0x7   :  { %2158 = vmatpush3.bf16.msra.mxu0 %v2708_v3  ;;  %2692 = vmatpush3.bf16.msra.mxu1 %v2708_v3  ;;  %v2721_v18 = vld [vmem:[%s3549_s1] ss:$8 sps:$4 sm:$0xff]   ;;  %v2727_v20 = vld [vmem:[%s3549_s1 + $0x14] ss:$8 sps:$4 sm:$0xff]   ;;  %v2731_v22 = vld [vmem:[%s3549_s1 + $0x10] ss:$8 sps:$4 sm:$0xff]  }
   0x8   :  { %2159 = vmatprep.subr.bf16.mxu0 %v2709_v4  ;;  %2685 = vmatprep.subr.bf16.mxu1 %v2709_v4  ;;  %v2724_v19 = vld [vmem:[%s3549_s1 + $0x80] ss:$8 sps:$4 sm:$0xff]   ;;  %v2729_v21 = vld [vmem:[%s3549_s1 + $0x94] ss:$8 sps:$4 sm:$0xff]   ;;  %v2732_v23 = vld [vmem:[%s3549_s1 + $0x90] ss:$8 sps:$4 sm:$0xff]  }
   0x9   :  { %486 = vmatprep.mubr.bf16.mxu1 %v2726_v12  ;;  %v2733_v24 = vld [vmem:[%s3549_s1 + $0x24] ss:$8 sps:$4 sm:$0xff]   ;;  %v2737_v26 = vld [vmem:[%s3549_s1 + $0x20] ss:$8 sps:$4 sm:$0xff]   ;;  %v2739_v28 = vld [vmem:[%s3549_s1 + $0x34] ss:$8 sps:$4 sm:$0xff]  }
   0xa   :  { %v2735_v25 = vld [vmem:[%s3549_s1 + $0xa4] ss:$8 sps:$4 sm:$0xff]   ;;  %v2738_v27 = vld [vmem:[%s3549_s1 + $0xa0] ss:$8 sps:$4 sm:$0xff]   ;;  %v2741_v29 = vld [vmem:[%s3549_s1 + $0xb4] ss:$8 sps:$4 sm:$0xff]  }
   0xb   :  { %2160 = vmatpush3.bf16.msra.mxu0 %v2710_v5  ;;  %2693 = vmatpush3.bf16.msra.mxu1 %v2710_v5  ;;  %v2743_v30 = vld [vmem:[%s3549_s1 + $0x30] ss:$8 sps:$4 sm:$0xff]   ;;  %v2745_v32 = vld [vmem:[%s3549_s1 + $0x44] ss:$8 sps:$4 sm:$0xff]  }
   0xc   :  { %2161 = vmatprep.subr.bf16.mxu0 %v2711_v6  ;;  %2686 = vmatprep.subr.bf16.mxu1 %v2711_v6  ;;  %v2744_v31 = vld [vmem:[%s3549_s1 + $0xb0] ss:$8 sps:$4 sm:$0xff]   ;;  %v2747_v33 = vld [vmem:[%s3549_s1 + $0xc4] ss:$8 sps:$4 sm:$0xff]  }
   0xf   :  { %2162 = vmatpush3.bf16.msra.mxu0 %v2712_v7  ;;  %2694 = vmatpush3.bf16.msra.mxu1 %v2712_v7 }
  0x10   :  { %2163 = vmatprep.subr.bf16.mxu0 %v2713_v8  ;;  %2687 = vmatprep.subr.bf16.mxu1 %v2713_v8 }
  0x13   :  { %2164 = vmatpush3.bf16.msra.mxu0 %v2714_v9  ;;  %2695 = vmatpush3.bf16.msra.mxu1 %v2714_v9 }
  0x14   :  { %2165 = vmatprep.subr.bf16.mxu0 %v2715_v10  ;;  %2688 = vmatprep.subr.bf16.mxu1 %v2715_v10 }
  0x17   :  { %2166 = vmatpush3.bf16.msra.mxu0 %v2716_v13  ;;  %2696 = vmatpush3.bf16.msra.mxu1 %v2716_v13 }
  0x18   :  { %2167 = vmatprep.subr.bf16.mxu0 %v2717_v14  ;;  %2689 = vmatprep.subr.bf16.mxu1 %v2717_v14 }
  0x1b   :  { %2168 = vmatpush3.bf16.msra.mxu0 %v2718_v15  ;;  %2697 = vmatpush3.bf16.msra.mxu1 %v2718_v15 }
  0x1c   :  { %2169 = vmatprep.subr.bf16.mxu0 %v2719_v16  ;;  %2690 = vmatprep.subr.bf16.mxu1 %v2719_v16 }
  0x1f   :  { %2170 = vmatpush3.bf16.msra.mxu0 %v2720_v17  ;;  %2698 = vmatpush3.bf16.msra.mxu1 %v2720_v17 }
  0x22   :  { %423 = vmatmul.mubr.bf16.vlgmr.msra.gmra.mrb[0].mxu0 %v2721_v18  ;;  %487 = vmatmul.mubr.bf16.vlgmr.msra.gmra.mrb[0].mxu1 %v2724_v19 }
  0x23   :  { %430 = vmatprep.mubr.bf16.mxu0 %v2727_v20  ;;  %494 = vmatprep.mubr.bf16.mxu1 %v2729_v21 }
  0x2a   :  { %431 = vmatmul.mubr.bf16.gmra.mrb[4].mxu0 %v2731_v22  ;;  %495 = vmatmul.mubr.bf16.gmra.mrb[4].mxu1 %v2732_v23 }
  0x2b   :  { %438 = vmatprep.mubr.bf16.mxu0 %v2733_v24  ;;  %502 = vmatprep.mubr.bf16.mxu1 %v2735_v25 }
  0x32   :  { %439 = vmatmul.mubr.bf16.gmra.mrb[8].mxu0 %v2737_v26  ;;  %503 = vmatmul.mubr.bf16.gmra.mrb[8].mxu1 %v2738_v27 }
  0x33   :  { %446 = vmatprep.mubr.bf16.mxu0 %v2739_v28  ;;  %510 = vmatprep.mubr.bf16.mxu1 %v2741_v29 }
  0x3a   :  { %447 = vmatmul.mubr.bf16.gmra.mrb[12].mxu0 %v2743_v30  ;;  %511 = vmatmul.mubr.bf16.gmra.mrb[12].mxu1 %v2744_v31 }
  0x3b   :  { %16 = vsyncpa [#allocation6], 0  ;;  %454 = vmatprep.mubr.bf16.mxu0 %v2745_v32  ;;  %518 = vmatprep.mubr.bf16.mxu1 %v2747_v33  ;;  %v2749_v34 = vld [vmem:[%s3549_s1 + $0x40] ss:$8 sps:$4 sm:$0xff]   ;;  %v2751_v36 = vld [vmem:[%s3549_s1 + $0x54] ss:$8 sps:$4 sm:$0xff]  }
  0x3c   :  { %v2750_v35 = vld [vmem:[%s3549_s1 + $0xc0] ss:$8 sps:$4 sm:$0xff]   ;;  %v2753_v37 = vld [vmem:[%s3549_s1 + $0xd4] ss:$8 sps:$4 sm:$0xff]   ;;  %v2755_v38 = vld [vmem:[%s3549_s1 + $0x50] ss:$8 sps:$4 sm:$0xff]  }
  0x3d   :  { %v2756_v39 = vld [vmem:[%s3549_s1 + $0xd0] ss:$8 sps:$4 sm:$0xff]   ;;  %v2757_v40 = vld [vmem:[%s3549_s1 + $0x64] ss:$8 sps:$4 sm:$0xff]   ;;  %v2761_v42 = vld [vmem:[%s3549_s1 + $0x60] ss:$8 sps:$4 sm:$0xff]  }
  0x3e   :  { %v2759_v41 = vld [vmem:[%s3549_s1 + $0xe4] ss:$8 sps:$4 sm:$0xff]   ;;  %v2762_v43 = vld [vmem:[%s3549_s1 + $0xe0] ss:$8 sps:$4 sm:$0xff]   ;;  %v2763_v44 = vld [vmem:[%s3549_s1 + $0x74] ss:$8 sps:$4 sm:$0xff]  }
  0x3f   :  { %v2765_v45 = vld [vmem:[%s3549_s1 + $0xf4] ss:$8 sps:$4 sm:$0xff]   ;;  %v2767_v46 = vld [vmem:[%s3549_s1 + $0x70] ss:$8 sps:$4 sm:$0xff]   ;;  %v3084_v48 = vld [vmem:[%s3548_s0 + $0x4] ss:$8 sps:$4 sm:$0xff]  }
  0x40   :  { %v2768_v47 = vld [vmem:[%s3549_s1 + $0xf0] ss:$8 sps:$4 sm:$0xff]  }
  0x42   :  { %455 = vmatmul.mubr.bf16.gmra.mrb[16].mxu0 %v2749_v34  ;;  %519 = vmatmul.mubr.bf16.gmra.mrb[16].mxu1 %v2750_v35 }
  0x43   :  { %462 = vmatprep.mubr.bf16.mxu0 %v2751_v36  ;;  %526 = vmatprep.mubr.bf16.mxu1 %v2753_v37 }
  0x4a   :  { %463 = vmatmul.mubr.bf16.gmra.mrb[20].mxu0 %v2755_v38  ;;  %527 = vmatmul.mubr.bf16.gmra.mrb[20].mxu1 %v2756_v39 }
  0x4b   :  { %470 = vmatprep.mubr.bf16.mxu0 %v2757_v40  ;;  %534 = vmatprep.mubr.bf16.mxu1 %v2759_v41 }
  0x52   :  { %471 = vmatmul.mubr.bf16.gmra.mrb[24].mxu0 %v2761_v42  ;;  %535 = vmatmul.mubr.bf16.gmra.mrb[24].mxu1 %v2762_v43 }
  0x53   :  { %478 = vmatprep.mubr.bf16.mxu0 %v2763_v44  ;;  %542 = vmatprep.mubr.bf16.mxu1 %v2765_v45 }
  0x5a   :  { %479 = vmatmul.mubr.bf16.gmra.mrb[28].mxu0 %v2767_v46  ;;  %543 = vmatmul.mubr.bf16.gmra.mrb[28].mxu1 %v2768_v47 }
  0x5b   :  { %766 = vmatprep.mubr.bf16.mxu1 %v3084_v48 }
  0xf5   :  { %v2171_v49 = vpop.f32.mrb[0].mxu0  ;;  %v2219_v50 = vpop.f32.mrb[0].mxu1 }
  0xf6   :  { %v2172_v51 = vpop.f32.mrb[1].mxu0  ;;  %v2220_v52 = vpop.f32.mrb[1].mxu1 }
  0xf7   :  { %v2173_v53 = vadd.f32 %v2172_v51, %v2171_v49  ;;  %v2221_v54 = vadd.f32 %v2220_v52, %v2219_v50  ;;  %v2174_v55 = vpop.f32.mrb[2].mxu0  ;;  %v2222_v56 = vpop.f32.mrb[2].mxu1 }
  0xf8   :  { %v2175_v57 = vpop.f32.mrb[3].mxu0  ;;  %v2223_v58 = vpop.f32.mrb[3].mxu1 }
  0xf9   :  { %v2176_v59 = vadd.f32 %v2175_v57, %v2174_v55  ;;  %v2224_v60 = vadd.f32 %v2223_v58, %v2222_v56 }
  0xfb   :  { %v551_v61 = vpack.c.bf16 %v2176_v59, %v2173_v53  ;;  %v559_v62 = vpack.c.bf16 %v2224_v60, %v2221_v54 }
  0xfd   :  { %v2177_v63 = vpop.f32.mrb[4].mxu0  ;;  %v2225_v0 = vpop.f32.mrb[4].mxu1  ;;  %2267 = vmatprep.subr.bf16.mxu1 %v559_v62 }
  0xfe   :  { %v2178_v1 = vpop.f32.mrb[5].mxu0  ;;  %v2226_v2 = vpop.f32.mrb[5].mxu1  ;;  %2268 = vmatpush3.bf16.msra.mxu1 %v551_v61 }
  0xff   :  { %v2179_v3 = vadd.f32 %v2178_v1, %v2177_v63  ;;  %v2227_v4 = vadd.f32 %v2226_v2, %v2225_v0  ;;  %v2180_v5 = vpop.f32.mrb[6].mxu0  ;;  %v2228_v6 = vpop.f32.mrb[6].mxu1 }
 0x100   :  { %v2181_v7 = vpop.f32.mrb[7].mxu0  ;;  %v2229_v8 = vpop.f32.mrb[7].mxu1 }
 0x101   :  { %v2182_v9 = vadd.f32 %v2181_v7, %v2180_v5  ;;  %v2230_v10 = vadd.f32 %v2229_v8, %v2228_v6 }
 0x103   :  { %v552_v11 = vpack.c.bf16 %v2182_v9, %v2179_v3  ;;  %v560_v12 = vpack.c.bf16 %v2230_v10, %v2227_v4 }
 0x105   :  { %v2183_v13 = vpop.f32.mrb[8].mxu0  ;;  %v2231_v14 = vpop.f32.mrb[8].mxu1  ;;  %2269 = vmatprep.subr.bf16.mxu1 %v560_v12 }
 0x106   :  { %v2184_v15 = vpop.f32.mrb[9].mxu0  ;;  %v2232_v16 = vpop.f32.mrb[9].mxu1  ;;  %2270 = vmatpush3.bf16.msra.mxu1 %v552_v11 }
 0x107   :  { %v2185_v17 = vadd.f32 %v2184_v15, %v2183_v13  ;;  %v2233_v18 = vadd.f32 %v2232_v16, %v2231_v14  ;;  %v2186_v19 = vpop.f32.mrb[10].mxu0  ;;  %v2234_v20 = vpop.f32.mrb[10].mxu1 }
 0x108   :  { %v2187_v21 = vpop.f32.mrb[11].mxu0  ;;  %v2235_v22 = vpop.f32.mrb[11].mxu1 }
 0x109   :  { %v2188_v23 = vadd.f32 %v2187_v21, %v2186_v19  ;;  %v2236_v24 = vadd.f32 %v2235_v22, %v2234_v20 }
 0x10b   :  { %v553_v25 = vpack.c.bf16 %v2188_v23, %v2185_v17  ;;  %v561_v26 = vpack.c.bf16 %v2236_v24, %v2233_v18 }
 0x10d   :  { %v2189_v27 = vpop.f32.mrb[12].mxu0  ;;  %v2237_v28 = vpop.f32.mrb[12].mxu1  ;;  %2271 = vmatprep.subr.bf16.mxu1 %v561_v26 }
 0x10e   :  { %v2190_v29 = vpop.f32.mrb[13].mxu0  ;;  %v2238_v30 = vpop.f32.mrb[13].mxu1  ;;  %2272 = vmatpush3.bf16.msra.mxu1 %v553_v25 }
 0x10f   :  { %v2191_v31 = vadd.f32 %v2190_v29, %v2189_v27  ;;  %v2239_v32 = vadd.f32 %v2238_v30, %v2237_v28  ;;  %v2192_v33 = vpop.f32.mrb[14].mxu0  ;;  %v2240_v34 = vpop.f32.mrb[14].mxu1 }
 0x110   :  { %v2193_v35 = vpop.f32.mrb[15].mxu0  ;;  %v2241_v36 = vpop.f32.mrb[15].mxu1 }
 0x111   :  { %v2194_v37 = vadd.f32 %v2193_v35, %v2192_v33  ;;  %v2242_v38 = vadd.f32 %v2241_v36, %v2240_v34  ;;  %v2818_v33 = vld [vmem:[%s3552_s4 + $0x8] sm:$0xff]  }
 0x112   :  { %v3096_v36 = vld [vmem:[%s3548_s0] ss:$8 sps:$4 sm:$0xff]  }
 0x113   :  { %v554_v39 = vpack.c.bf16 %v2194_v37, %v2191_v31  ;;  %v562_v40 = vpack.c.bf16 %v2242_v38, %v2239_v32  ;;  %v2817_v32 = vld [vmem:[%s3552_s4] sm:$0xff]   ;;  %v2819_v37 = vld [vmem:[%s3552_s4 + $0x10] sm:$0xff]  }
 0x114   :  { %2587 = vmatprep.subr.bf16.mxu0 %v2817_v32  ;;  %v3104_v38 = vld [vmem:[%s3548_s0 + $0x14] ss:$8 sps:$4 sm:$0xff]  }
 0x115   :  { %v2195_v41 = vpop.f32.mrb[16].mxu0  ;;  %v2243_v42 = vpop.f32.mrb[16].mxu1  ;;  %2273 = vmatprep.subr.bf16.mxu1 %v562_v40  ;;  %2588 = vmatpush3.bf16.msra.mxu0 %v2817_v32  ;;  %v3116_v40 = vld [vmem:[%s3548_s0 + $0x24] ss:$8 sps:$4 sm:$0xff]  }
 0x116   :  { %v2196_v43 = vpop.f32.mrb[17].mxu0  ;;  %v2244_v44 = vpop.f32.mrb[17].mxu1  ;;  %2274 = vmatpush3.bf16.msra.mxu1 %v554_v39  ;;  %2589 = vmatprep.subr.bf16.mxu0 %v2818_v33  ;;  %v3111_v39 = vld [vmem:[%s3548_s0 + $0x10] ss:$8 sps:$4 sm:$0xff]  }
 0x117   :  { %v2197_v45 = vadd.f32 %v2196_v43, %v2195_v41  ;;  %v2245_v46 = vadd.f32 %v2244_v44, %v2243_v42  ;;  %v2198_v47 = vpop.f32.mrb[18].mxu0  ;;  %v2246_v49 = vpop.f32.mrb[18].mxu1  ;;  %v3123_v41 = vld [vmem:[%s3548_s0 + $0x20] ss:$8 sps:$4 sm:$0xff]   ;;  %v3128_v42 = vld [vmem:[%s3548_s0 + $0x34] ss:$8 sps:$4 sm:$0xff]  }
 0x118   :  { %v2199_v50 = vpop.f32.mrb[19].mxu0  ;;  %v2247_v51 = vpop.f32.mrb[19].mxu1  ;;  %v3135_v43 = vld [vmem:[%s3548_s0 + $0x30] ss:$8 sps:$4 sm:$0xff]   ;;  %v3140_v44 = vld [vmem:[%s3548_s0 + $0x44] ss:$8 sps:$4 sm:$0xff]  }
 0x119   :  { %v2200_v52 = vadd.f32 %v2199_v50, %v2198_v47  ;;  %v2248_v53 = vadd.f32 %v2247_v51, %v2246_v49  ;;  %2590 = vmatpush3.bf16.msra.mxu0 %v2818_v33  ;;  %v3159_v47 = vld [vmem:[%s3548_s0 + $0x50] ss:$8 sps:$4 sm:$0xff]   ;;  %v3164_v49 = vld [vmem:[%s3548_s0 + $0x64] ss:$8 sps:$4 sm:$0xff]   ;;  %v3171_v50 = vld [vmem:[%s3548_s0 + $0x60] ss:$8 sps:$4 sm:$0xff]  }
 0x11a   :  { %2591 = vmatprep.subr.bf16.mxu0 %v2819_v37  ;;  %v3176_v51 = vld [vmem:[%s3548_s0 + $0x74] ss:$8 sps:$4 sm:$0xff]  }
 0x11b   :  { %v555_v54 = vpack.c.bf16 %v2200_v52, %v2197_v45  ;;  %v563_v55 = vpack.c.bf16 %v2248_v53, %v2245_v46  ;;  %v3147_v45 = vld [vmem:[%s3548_s0 + $0x40] ss:$8 sps:$4 sm:$0xff]   ;;  %v3152_v46 = vld [vmem:[%s3548_s0 + $0x54] ss:$8 sps:$4 sm:$0xff]   ;;  %v3183_v52 = vld [vmem:[%s3548_s0 + $0x70] ss:$8 sps:$4 sm:$0xff]  }
 0x11c   :  { %v3188_v53 = vld [vmem:[%s3548_s0 + $0x84] ss:$8 sps:$4 sm:$0xff]  }
 0x11d   :  { %v2201_v56 = vpop.f32.mrb[20].mxu0  ;;  %v2249_v57 = vpop.f32.mrb[20].mxu1  ;;  %2275 = vmatprep.subr.bf16.mxu1 %v563_v55  ;;  %2592 = vmatpush3.bf16.msra.mxu0 %v2819_v37  ;;  %v3200_v55 = vld [vmem:[%s3548_s0 + $0x94] ss:$8 sps:$4 sm:$0xff]  }
 0x11e   :  { %v2202_v58 = vpop.f32.mrb[21].mxu0  ;;  %v2250_v59 = vpop.f32.mrb[21].mxu1  ;;  %2276 = vmatpush3.bf16.msra.mxu1 %v555_v54  ;;  %v3195_v54 = vld [vmem:[%s3548_s0 + $0x80] ss:$8 sps:$4 sm:$0xff]  }
 0x11f   :  { %v2203_v60 = vadd.f32 %v2202_v58, %v2201_v56  ;;  %v2251_v61 = vadd.f32 %v2250_v59, %v2249_v57  ;;  %v2204_v62 = vpop.f32.mrb[22].mxu0  ;;  %v2252_v63 = vpop.f32.mrb[22].mxu1  ;;  %v3207_v56 = vld [vmem:[%s3548_s0 + $0x90] ss:$8 sps:$4 sm:$0xff]   ;;  %v3212_v57 = vld [vmem:[%s3548_s0 + $0xa4] ss:$8 sps:$4 sm:$0xff]  }
 0x120   :  { %v2205_v0 = vpop.f32.mrb[23].mxu0  ;;  %v2253_v1 = vpop.f32.mrb[23].mxu1  ;;  %v3219_v58 = vld [vmem:[%s3548_s0 + $0xa0] ss:$8 sps:$4 sm:$0xff]   ;;  %v3224_v59 = vld [vmem:[%s3548_s0 + $0xb4] ss:$8 sps:$4 sm:$0xff]  }
 0x121   :  { %v2206_v2 = vadd.f32 %v2205_v0, %v2204_v62  ;;  %v2254_v3 = vadd.f32 %v2253_v1, %v2252_v63  ;;  %v3239_v62 = vld [vmem:[%s3548_s0 + $0xc4] ss:$8 sps:$4 sm:$0xff]   ;;  %v3252_v1 = vld [vmem:[%s3548_s0 + $0xc0] ss:$8 sps:$4 sm:$0xff]  }
 0x122   :  { %v2821_v63 = vld [vmem:[%s3552_s4 + $0x20] sm:$0xff]   ;;  %v2822_v0 = vld [vmem:[%s3552_s4 + $0x28] sm:$0xff]  }
 0x123   :  { %v556_v4 = vpack.c.bf16 %v2206_v2, %v2203_v60  ;;  %v564_v5 = vpack.c.bf16 %v2254_v3, %v2251_v61  ;;  %v2820_v60 = vld [vmem:[%s3552_s4 + $0x18] sm:$0xff]   ;;  %v2823_v3 = vld [vmem:[%s3552_s4 + $0x30] sm:$0xff]  }
 0x124   :  { %2593 = vmatprep.subr.bf16.mxu0 %v2820_v60  ;;  %v3234_v61 = vld [vmem:[%s3548_s0 + $0xb0] ss:$8 sps:$4 sm:$0xff]   ;;  %v3257_v2 = vld [vmem:[%s3548_s0 + $0xd4] ss:$8 sps:$4 sm:$0xff]  }
 0x125   :  { %v2207_v6 = vpop.f32.mrb[24].mxu0  ;;  %v2255_v7 = vpop.f32.mrb[24].mxu1  ;;  %2277 = vmatprep.subr.bf16.mxu1 %v564_v5  ;;  %2594 = vmatpush3.bf16.msra.mxu0 %v2820_v60  ;;  %v3270_v5 = vld [vmem:[%s3548_s0 + $0xd0] ss:$8 sps:$4 sm:$0xff]  }
 0x126   :  { %v2208_v8 = vpop.f32.mrb[25].mxu0  ;;  %v2256_v9 = vpop.f32.mrb[25].mxu1  ;;  %2278 = vmatpush3.bf16.msra.mxu1 %v556_v4  ;;  %2595 = vmatprep.subr.bf16.mxu0 %v2821_v63  ;;  %v2824_v4 = vld [vmem:[%s3552_s4 + $0x38] sm:$0xff]  }
 0x127   :  { %v2209_v10 = vadd.f32 %v2208_v8, %v2207_v6  ;;  %v2257_v11 = vadd.f32 %v2256_v9, %v2255_v7  ;;  %v2210_v12 = vpop.f32.mrb[26].mxu0  ;;  %v2258_v13 = vpop.f32.mrb[26].mxu1  ;;  %v3275_v6 = vld [vmem:[%s3548_s0 + $0xe4] ss:$8 sps:$4 sm:$0xff]   ;;  %v3282_v7 = vld [vmem:[%s3548_s0 + $0xe0] ss:$8 sps:$4 sm:$0xff]  }
 0x128   :  { %v2211_v14 = vpop.f32.mrb[27].mxu0  ;;  %v2259_v15 = vpop.f32.mrb[27].mxu1  ;;  %v3287_v8 = vld [vmem:[%s3548_s0 + $0xf4] ss:$8 sps:$4 sm:$0xff]   ;;  %v3294_v9 = vld [vmem:[%s3548_s0 + $0xf0] ss:$8 sps:$4 sm:$0xff]  }
 0x129   :  { %v2212_v16 = vadd.f32 %v2211_v14, %v2210_v12  ;;  %v2260_v17 = vadd.f32 %v2259_v15, %v2258_v13  ;;  %2596 = vmatpush3.bf16.msra.mxu0 %v2821_v63 }
 0x12a   :  { %2597 = vmatprep.subr.bf16.mxu0 %v2822_v0 }
 0x12b   :  { %v557_v18 = vpack.c.bf16 %v2212_v16, %v2209_v10  ;;  %v565_v19 = vpack.c.bf16 %v2260_v17, %v2257_v11  ;;  %v3301_v11 = vld [vmem:[%s3551_s3] ss:$0 sm:$0xff] }
 0x12d   :  { %v2213_v20 = vpop.f32.mrb[28].mxu0  ;;  %v2261_v21 = vpop.f32.mrb[28].mxu1  ;;  %2279 = vmatprep.subr.bf16.mxu1 %v565_v19  ;;  %2598 = vmatpush3.bf16.msra.mxu0 %v2822_v0 }
 0x12e   :  { %v2214_v22 = vpop.f32.mrb[29].mxu0  ;;  %v2262_v23 = vpop.f32.mrb[29].mxu1  ;;  %2280 = vmatpush3.bf16.msra.mxu1 %v557_v18  ;;  %2599 = vmatprep.subr.bf16.mxu0 %v2823_v3 }
 0x12f   :  { %v2215_v24 = vadd.f32 %v2214_v22, %v2213_v20  ;;  %v2263_v25 = vadd.f32 %v2262_v23, %v2261_v21  ;;  %v2216_v26 = vpop.f32.mrb[30].mxu0  ;;  %v2264_v27 = vpop.f32.mrb[30].mxu1 }
 0x130   :  { %v2217_v28 = vpop.f32.mrb[31].mxu0  ;;  %v2265_v29 = vpop.f32.mrb[31].mxu1 }
 0x131   :  { %v2218_v30 = vadd.f32 %v2217_v28, %v2216_v26  ;;  %v2266_v31 = vadd.f32 %v2265_v29, %v2264_v27  ;;  %2600 = vmatpush3.bf16.msra.mxu0 %v2823_v3 }
 0x132   :  { %2601 = vmatprep.subr.bf16.mxu0 %v2824_v4 }
 0x133   :  { %v558_v34 = vpack.c.bf16 %v2218_v30, %v2215_v24  ;;  %v566_v35 = vpack.c.bf16 %v2266_v31, %v2263_v25 }
 0x135   :  { %2281 = vmatprep.subr.bf16.mxu1 %v566_v35  ;;  %2602 = vmatpush3.bf16.msra.mxu0 %v2824_v4 }
 0x136   :  { %2282 = vmatpush3.bf16.msra.mxu1 %v558_v34 }
 0x139   :  { %767 = vmatmul.mubr.bf16.vlgmr.msra.gmra.mrb[32].mxu1 %v3096_v36 }
 0x13a   :  { %774 = vmatprep.mubr.bf16.mxu1 %v3104_v38 }
 0x141   :  { %775 = vmatmul.mubr.bf16.gmra.mrb[36].mxu1 %v3111_v39 }
 0x142   :  { %782 = vmatprep.mubr.bf16.mxu1 %v3116_v40 }
 0x149   :  { %783 = vmatmul.mubr.bf16.gmra.mrb[40].mxu1 %v3123_v41 }
 0x14a   :  { %790 = vmatprep.mubr.bf16.mxu1 %v3128_v42 }
 0x151   :  { %791 = vmatmul.mubr.bf16.gmra.mrb[44].mxu1 %v3135_v43 }
 0x152   :  { %798 = vmatprep.mubr.bf16.mxu1 %v3140_v44 }
 0x159   :  { %799 = vmatmul.mubr.bf16.gmra.mrb[48].mxu1 %v3147_v45 }
 0x15a   :  { %806 = vmatprep.mubr.bf16.mxu1 %v3152_v46 }
 0x161   :  { %807 = vmatmul.mubr.bf16.gmra.mrb[52].mxu1 %v3159_v47 }
 0x162   :  { %814 = vmatprep.mubr.bf16.mxu1 %v3164_v49 }
 0x169   :  { %815 = vmatmul.mubr.bf16.gmra.mrb[56].mxu1 %v3171_v50 }
 0x16a   :  { %822 = vmatprep.mubr.bf16.mxu1 %v3176_v51 }
 0x171   :  { %823 = vmatmul.mubr.bf16.gmra.mrb[60].mxu1 %v3183_v52 }
 0x172   :  { %830 = vmatprep.mubr.bf16.mxu1 %v3188_v53 }
 0x179   :  { %831 = vmatmul.mubr.bf16.gmra.mrb[64].mxu1 %v3195_v54 }
 0x17a   :  { %838 = vmatprep.mubr.bf16.mxu1 %v3200_v55 }
 0x181   :  { %839 = vmatmul.mubr.bf16.gmra.mrb[68].mxu1 %v3207_v56 }
 0x182   :  { %846 = vmatprep.mubr.bf16.mxu1 %v3212_v57 }
 0x189   :  { %847 = vmatmul.mubr.bf16.gmra.mrb[72].mxu1 %v3219_v58 }
 0x18a   :  { %854 = vmatprep.mubr.bf16.mxu1 %v3224_v59 }
 0x191   :  { %855 = vmatmul.mubr.bf16.gmra.mrb[76].mxu1 %v3234_v61 }
 0x192   :  { %862 = vmatprep.mubr.bf16.mxu1 %v3239_v62 }
 0x199   :  { %863 = vmatmul.mubr.bf16.gmra.mrb[80].mxu1 %v3252_v1 }
 0x19a   :  { %870 = vmatprep.mubr.bf16.mxu1 %v3257_v2 }
 0x1a1   :  { %871 = vmatmul.mubr.bf16.gmra.mrb[84].mxu1 %v3270_v5 }
 0x1a2   :  { %878 = vmatprep.mubr.bf16.mxu1 %v3275_v6 }
 0x1a9   :  { %879 = vmatmul.mubr.bf16.gmra.mrb[88].mxu1 %v3282_v7 }
 0x1aa   :  { %886 = vmatprep.mubr.bf16.mxu1 %v3287_v8 }
 0x1b1   :  { %887 = vmatmul.mubr.bf16.gmra.mrb[92].mxu1 %v3294_v9 }
 0x1b2   :  { %1223 = vmatprep.mubr.bf16.mxu1 %v3084_v48 }
 0x20c   :  { %v2283_v10 = vpop.f32.mrb[32].mxu1 }
 0x20d   :  { %v2284_v12 = vpop.f32.mrb[33].mxu1 }
 0x20e   :  { %v2285_v13 = vadd.f32 %v2284_v12, %v2283_v10  ;;  %v2286_v14 = vpop.f32.mrb[34].mxu1 }
 0x20f   :  { %v2287_v15 = vpop.f32.mrb[35].mxu1 }
 0x210   :  { %v769_v16 = vadd.f32 %v2285_v13, %v3301_v11  ;;  %v2288_v17 = vadd.f32 %v2287_v15, %v2286_v14 }
 0x212   :  { %v772_v18 = vadd.f32 %v2288_v17, %v3301_v11  ;;  %v895_v19 = vmax.f32 %v769_v16, 0.0 }
 0x214   :  { %v896_v20 = vmax.f32 %v772_v18, 0.0  ;;  %v2289_v21 = vpop.f32.mrb[36].mxu1 }
 0x215   :  { %v2290_v22 = vpop.f32.mrb[37].mxu1 }
 0x216   :  { %v2291_v48 = vadd.f32 %v2290_v22, %v2289_v21  ;;  %v2292_v23 = vpop.f32.mrb[38].mxu1  ;;  %v927_v24 = vpack.c.bf16 %v896_v20, %v895_v19 }
 0x217   :  { %v2293_v25 = vpop.f32.mrb[39].mxu1 }
 0x218   :  { %v777_v26 = vadd.f32 %v2291_v48, %v3301_v11  ;;  %v2294_v27 = vadd.f32 %v2293_v25, %v2292_v23  ;;  %2603 = vmatprep.mubr.bf16.mxu0 %v927_v24 }
 0x21a   :  { %v780_v28 = vadd.f32 %v2294_v27, %v3301_v11  ;;  %v897_v29 = vmax.f32 %v777_v26, 0.0 }
 0x21c   :  { %v898_v30 = vmax.f32 %v780_v28, 0.0  ;;  %v2295_v31 = vpop.f32.mrb[40].mxu1 }
 0x21d   :  { %v2296_v32 = vpop.f32.mrb[41].mxu1 }
 0x21e   :  { %v928_v33 = vpack.c.bf16 %v898_v30, %v897_v29  ;;  %v2297_v34 = vadd.f32 %v2296_v32, %v2295_v31  ;;  %v2298_v35 = vpop.f32.mrb[42].mxu1 }
 0x21f   :  { %v2299_v37 = vpop.f32.mrb[43].mxu1 }
 0x220   :  { %v785_v60 = vadd.f32 %v2297_v34, %v3301_v11  ;;  %v2300_v63 = vadd.f32 %v2299_v37, %v2298_v35  ;;  %2604 = vmatmul.mubr.bf16.vlgmr.msra.gmra.mrb[32].mxu0 %v928_v33 }
 0x222   :  { %v788_v0 = vadd.f32 %v2300_v63, %v3301_v11  ;;  %v899_v3 = vmax.f32 %v785_v60, 0.0 }
 0x224   :  { %v900_v4 = vmax.f32 %v788_v0, 0.0  ;;  %v2301_v10 = vpop.f32.mrb[44].mxu1 }
 0x225   :  { %v2302_v12 = vpop.f32.mrb[45].mxu1 }
 0x226   :  { %v2303_v13 = vadd.f32 %v2302_v12, %v2301_v10  ;;  %v2304_v14 = vpop.f32.mrb[46].mxu1  ;;  %v929_v15 = vpack.c.bf16 %v900_v4, %v899_v3 }
 0x227   :  { %v2305_v16 = vpop.f32.mrb[47].mxu1 }
 0x228   :  { %v793_v17 = vadd.f32 %v2303_v13, %v3301_v11  ;;  %v2306_v18 = vadd.f32 %v2305_v16, %v2304_v14  ;;  %2607 = vmatprep.mubr.bf16.mxu0 %v929_v15 }
 0x22a   :  { %v796_v19 = vadd.f32 %v2306_v18, %v3301_v11  ;;  %v901_v20 = vmax.f32 %v793_v17, 0.0 }
 0x22c   :  { %v902_v21 = vmax.f32 %v796_v19, 0.0  ;;  %v2307_v22 = vpop.f32.mrb[48].mxu1 }
 0x22d   :  { %v2308_v48 = vpop.f32.mrb[49].mxu1 }
 0x22e   :  { %v2309_v23 = vadd.f32 %v2308_v48, %v2307_v22  ;;  %v2310_v24 = vpop.f32.mrb[50].mxu1  ;;  %v930_v25 = vpack.c.bf16 %v902_v21, %v901_v20 }
 0x22f   :  { %v2311_v26 = vpop.f32.mrb[51].mxu1 }
 0x230   :  { %v801_v27 = vadd.f32 %v2309_v23, %v3301_v11  ;;  %v2312_v28 = vadd.f32 %v2311_v26, %v2310_v24  ;;  %2608 = vmatmul.mubr.bf16.gmra.mrb[36].mxu0 %v930_v25 }
 0x232   :  { %v804_v29 = vadd.f32 %v2312_v28, %v3301_v11  ;;  %v903_v30 = vmax.f32 %v801_v27, 0.0 }
 0x234   :  { %v904_v31 = vmax.f32 %v804_v29, 0.0  ;;  %v2313_v32 = vpop.f32.mrb[52].mxu1 }
 0x235   :  { %v2314_v33 = vpop.f32.mrb[53].mxu1 }
 0x236   :  { %v2315_v34 = vadd.f32 %v2314_v33, %v2313_v32  ;;  %v2316_v35 = vpop.f32.mrb[54].mxu1  ;;  %v931_v37 = vpack.c.bf16 %v904_v31, %v903_v30 }
 0x237   :  { %v2317_v60 = vpop.f32.mrb[55].mxu1 }
 0x238   :  { %v809_v63 = vadd.f32 %v2315_v34, %v3301_v11  ;;  %v2318_v0 = vadd.f32 %v2317_v60, %v2316_v35  ;;  %2611 = vmatprep.mubr.bf16.mxu0 %v931_v37 }
 0x23a   :  { %v812_v3 = vadd.f32 %v2318_v0, %v3301_v11  ;;  %v905_v4 = vmax.f32 %v809_v63, 0.0 }
 0x23c   :  { %v906_v10 = vmax.f32 %v812_v3, 0.0  ;;  %v2319_v12 = vpop.f32.mrb[56].mxu1 }
 0x23d   :  { %v2320_v13 = vpop.f32.mrb[57].mxu1 }
 0x23e   :  { %v2321_v14 = vadd.f32 %v2320_v13, %v2319_v12  ;;  %v2322_v15 = vpop.f32.mrb[58].mxu1  ;;  %v932_v16 = vpack.c.bf16 %v906_v10, %v905_v4 }
 0x23f   :  { %v2323_v17 = vpop.f32.mrb[59].mxu1 }
 0x240   :  { %v817_v18 = vadd.f32 %v2321_v14, %v3301_v11  ;;  %v2324_v19 = vadd.f32 %v2323_v17, %v2322_v15  ;;  %2612 = vmatmul.mubr.bf16.gmra.mrb[40].mxu0 %v932_v16 }
 0x242   :  { %v820_v20 = vadd.f32 %v2324_v19, %v3301_v11  ;;  %v907_v21 = vmax.f32 %v817_v18, 0.0 }
 0x244   :  { %v908_v22 = vmax.f32 %v820_v20, 0.0  ;;  %v2325_v48 = vpop.f32.mrb[60].mxu1 }
 0x245   :  { %v2326_v23 = vpop.f32.mrb[61].mxu1 }
 0x246   :  { %v2327_v24 = vadd.f32 %v2326_v23, %v2325_v48  ;;  %v2328_v25 = vpop.f32.mrb[62].mxu1  ;;  %v933_v26 = vpack.c.bf16 %v908_v22, %v907_v21 }
 0x247   :  { %v2329_v27 = vpop.f32.mrb[63].mxu1 }
 0x248   :  { %v825_v28 = vadd.f32 %v2327_v24, %v3301_v11  ;;  %v2330_v29 = vadd.f32 %v2329_v27, %v2328_v25  ;;  %2615 = vmatprep.mubr.bf16.mxu0 %v933_v26 }
 0x24a   :  { %v828_v30 = vadd.f32 %v2330_v29, %v3301_v11  ;;  %v909_v31 = vmax.f32 %v825_v28, 0.0 }
 0x24c   :  { %v910_v32 = vmax.f32 %v828_v30, 0.0  ;;  %v2331_v33 = vpop.f32.mrb[64].mxu1 }
 0x24d   :  { %v2332_v34 = vpop.f32.mrb[65].mxu1 }
 0x24e   :  { %v2333_v35 = vadd.f32 %v2332_v34, %v2331_v33  ;;  %v2334_v37 = vpop.f32.mrb[66].mxu1  ;;  %v934_v60 = vpack.c.bf16 %v910_v32, %v909_v31 }
 0x24f   :  { %v2335_v63 = vpop.f32.mrb[67].mxu1 }
 0x250   :  { %v833_v0 = vadd.f32 %v2333_v35, %v3301_v11  ;;  %v2336_v3 = vadd.f32 %v2335_v63, %v2334_v37  ;;  %2616 = vmatmul.mubr.bf16.gmra.mrb[44].mxu0 %v934_v60 }
 0x252   :  { %v836_v4 = vadd.f32 %v2336_v3, %v3301_v11  ;;  %v911_v10 = vmax.f32 %v833_v0, 0.0 }
 0x254   :  { %v912_v12 = vmax.f32 %v836_v4, 0.0  ;;  %v2337_v13 = vpop.f32.mrb[68].mxu1 }
 0x255   :  { %v2338_v14 = vpop.f32.mrb[69].mxu1 }
 0x256   :  { %v2339_v15 = vadd.f32 %v2338_v14, %v2337_v13  ;;  %v2340_v16 = vpop.f32.mrb[70].mxu1  ;;  %v935_v17 = vpack.c.bf16 %v912_v12, %v911_v10 }
 0x257   :  { %v2341_v18 = vpop.f32.mrb[71].mxu1 }
 0x258   :  { %v841_v19 = vadd.f32 %v2339_v15, %v3301_v11  ;;  %v2342_v20 = vadd.f32 %v2341_v18, %v2340_v16  ;;  %2619 = vmatprep.mubr.bf16.mxu0 %v935_v17 }
 0x25a   :  { %v844_v21 = vadd.f32 %v2342_v20, %v3301_v11  ;;  %v913_v22 = vmax.f32 %v841_v19, 0.0 }
 0x25c   :  { %v914_v48 = vmax.f32 %v844_v21, 0.0  ;;  %v2343_v23 = vpop.f32.mrb[72].mxu1 }
 0x25d   :  { %v2344_v24 = vpop.f32.mrb[73].mxu1 }
 0x25e   :  { %v936_v25 = vpack.c.bf16 %v914_v48, %v913_v22  ;;  %v2345_v26 = vadd.f32 %v2344_v24, %v2343_v23  ;;  %v2346_v27 = vpop.f32.mrb[74].mxu1 }
 0x25f   :  { %v2347_v28 = vpop.f32.mrb[75].mxu1 }
 0x260   :  { %2620 = vmatmul.mubr.bf16.gmra.mrb[48].mxu0 %v936_v25  ;;  %v849_v29 = vadd.f32 %v2345_v26, %v3301_v11  ;;  %v2348_v30 = vadd.f32 %v2347_v28, %v2346_v27 }
 0x262   :  { %v852_v31 = vadd.f32 %v2348_v30, %v3301_v11  ;;  %v915_v32 = vmax.f32 %v849_v29, 0.0 }
 0x264   :  { %v916_v33 = vmax.f32 %v852_v31, 0.0  ;;  %v2349_v34 = vpop.f32.mrb[76].mxu1 }
 0x265   :  { %v2350_v35 = vpop.f32.mrb[77].mxu1 }
 0x266   :  { %v2351_v37 = vadd.f32 %v2350_v35, %v2349_v34  ;;  %v2352_v60 = vpop.f32.mrb[78].mxu1  ;;  %v937_v63 = vpack.c.bf16 %v916_v33, %v915_v32 }
 0x267   :  { %v2353_v0 = vpop.f32.mrb[79].mxu1 }
 0x268   :  { %v857_v3 = vadd.f32 %v2351_v37, %v3301_v11  ;;  %v2354_v4 = vadd.f32 %v2353_v0, %v2352_v60  ;;  %2623 = vmatprep.mubr.bf16.mxu0 %v937_v63 }
 0x26a   :  { %v860_v10 = vadd.f32 %v2354_v4, %v3301_v11  ;;  %v917_v12 = vmax.f32 %v857_v3, 0.0 }
 0x26c   :  { %v918_v13 = vmax.f32 %v860_v10, 0.0  ;;  %v2355_v14 = vpop.f32.mrb[80].mxu1 }
 0x26d   :  { %v2356_v15 = vpop.f32.mrb[81].mxu1 }
 0x26e   :  { %v938_v16 = vpack.c.bf16 %v918_v13, %v917_v12  ;;  %v2357_v17 = vadd.f32 %v2356_v15, %v2355_v14  ;;  %v2358_v18 = vpop.f32.mrb[82].mxu1 }
 0x26f   :  { %v2359_v19 = vpop.f32.mrb[83].mxu1 }
 0x270   :  { %2624 = vmatmul.mubr.bf16.gmra.mrb[52].mxu0 %v938_v16  ;;  %v865_v20 = vadd.f32 %v2357_v17, %v3301_v11  ;;  %v2360_v21 = vadd.f32 %v2359_v19, %v2358_v18 }
 0x272   :  { %v868_v22 = vadd.f32 %v2360_v21, %v3301_v11  ;;  %v919_v48 = vmax.f32 %v865_v20, 0.0 }
 0x274   :  { %v920_v23 = vmax.f32 %v868_v22, 0.0  ;;  %v2361_v24 = vpop.f32.mrb[84].mxu1 }
 0x275   :  { %v2362_v25 = vpop.f32.mrb[85].mxu1 }
 0x276   :  { %v2363_v26 = vadd.f32 %v2362_v25, %v2361_v24  ;;  %v2364_v27 = vpop.f32.mrb[86].mxu1  ;;  %v939_v28 = vpack.c.bf16 %v920_v23, %v919_v48 }
 0x277   :  { %v2365_v29 = vpop.f32.mrb[87].mxu1 }
 0x278   :  { %v873_v30 = vadd.f32 %v2363_v26, %v3301_v11  ;;  %v2366_v31 = vadd.f32 %v2365_v29, %v2364_v27  ;;  %2627 = vmatprep.mubr.bf16.mxu0 %v939_v28 }
 0x27a   :  { %v876_v32 = vadd.f32 %v2366_v31, %v3301_v11  ;;  %v921_v33 = vmax.f32 %v873_v30, 0.0 }
 0x27c   :  { %v922_v34 = vmax.f32 %v876_v32, 0.0  ;;  %v2367_v35 = vpop.f32.mrb[88].mxu1 }
 0x27d   :  { %v2368_v37 = vpop.f32.mrb[89].mxu1 }
 0x27e   :  { %v940_v60 = vpack.c.bf16 %v922_v34, %v921_v33  ;;  %v2369_v63 = vadd.f32 %v2368_v37, %v2367_v35  ;;  %v2370_v0 = vpop.f32.mrb[90].mxu1 }
 0x27f   :  { %v2371_v3 = vpop.f32.mrb[91].mxu1 }
 0x280   :  { %2628 = vmatmul.mubr.bf16.gmra.mrb[56].mxu0 %v940_v60  ;;  %v881_v4 = vadd.f32 %v2369_v63, %v3301_v11  ;;  %v2372_v10 = vadd.f32 %v2371_v3, %v2370_v0 }
 0x282   :  { %v884_v12 = vadd.f32 %v2372_v10, %v3301_v11  ;;  %v923_v13 = vmax.f32 %v881_v4, 0.0 }
 0x284   :  { %v924_v14 = vmax.f32 %v884_v12, 0.0  ;;  %v2373_v15 = vpop.f32.mrb[92].mxu1 }
 0x285   :  { %v2374_v16 = vpop.f32.mrb[93].mxu1 }
 0x286   :  { %v2375_v17 = vadd.f32 %v2374_v16, %v2373_v15  ;;  %v2376_v18 = vpop.f32.mrb[94].mxu1  ;;  %v941_v19 = vpack.c.bf16 %v924_v14, %v923_v13 }
 0x287   :  { %v2377_v20 = vpop.f32.mrb[95].mxu1 }
 0x288   :  { %v889_v21 = vadd.f32 %v2375_v17, %v3301_v11  ;;  %v2378_v22 = vadd.f32 %v2377_v20, %v2376_v18  ;;  %2631 = vmatprep.mubr.bf16.mxu0 %v941_v19 }
 0x28a   :  { %v892_v48 = vadd.f32 %v2378_v22, %v3301_v11  ;;  %v925_v23 = vmax.f32 %v889_v21, 0.0 }
 0x28c   :  { %v926_v24 = vmax.f32 %v892_v48, 0.0 }
 0x28e   :  { %v942_v25 = vpack.c.bf16 %v926_v24, %v925_v23 }
 0x290   :  { %2632 = vmatmul.mubr.bf16.gmra.mrb[60].mxu0 %v942_v25 }
 0x2f3   :  { %v2605_v26 = vpop.f32.mrb[32].mxu0 }
 0x2f4   :  { %v1041_v27 = vpop.f32.mrb[33].mxu0 }
 0x2f5   :  { %v2606_v28 = vpop.f32.mrb[34].mxu0 }
 0x2f6   :  { %v1169_v29 = vpack.c.bf16 %v2606_v28, %v2605_v26  ;;  %v1044_v30 = vpop.f32.mrb[35].mxu0 }
 0x2f7   :  { %v1168_v31 = vpack.c.bf16 %v1044_v30, %v1041_v27 }
 0x303   :  { %v2609_v32 = vpop.f32.mrb[36].mxu0 }
 0x304   :  { %v1057_v33 = vpop.f32.mrb[37].mxu0 }
 0x305   :  { %v2610_v34 = vpop.f32.mrb[38].mxu0 }
 0x306   :  { %v1171_v35 = vpack.c.bf16 %v2610_v34, %v2609_v32  ;;  %v1060_v37 = vpop.f32.mrb[39].mxu0 }
 0x307   :  { %v1170_v60 = vpack.c.bf16 %v1060_v37, %v1057_v33 }
 0x313   :  { %v2613_v63 = vpop.f32.mrb[40].mxu0 }
 0x314   :  { %v1073_v0 = vpop.f32.mrb[41].mxu0 }
 0x315   :  { %v2614_v3 = vpop.f32.mrb[42].mxu0 }
 0x316   :  { %v1173_v11 = vpack.c.bf16 %v2614_v3, %v2613_v63  ;;  %v1076_v4 = vpop.f32.mrb[43].mxu0 }
 0x317   :  { %v1172_v10 = vpack.c.bf16 %v1076_v4, %v1073_v0 }
 0x323   :  { %v2617_v12 = vpop.f32.mrb[44].mxu0 }
 0x324   :  { %v1089_v13 = vpop.f32.mrb[45].mxu0 }
 0x325   :  { %v2618_v14 = vpop.f32.mrb[46].mxu0 }
 0x326   :  { %v1175_v15 = vpack.c.bf16 %v2618_v14, %v2617_v12  ;;  %v1092_v16 = vpop.f32.mrb[47].mxu0 }
 0x327   :  { %v1174_v17 = vpack.c.bf16 %v1092_v16, %v1089_v13 }
 0x333   :  { %v2621_v18 = vpop.f32.mrb[48].mxu0 }
 0x334   :  { %v1105_v19 = vpop.f32.mrb[49].mxu0 }
 0x335   :  { %v2622_v20 = vpop.f32.mrb[50].mxu0 }
 0x336   :  { %v1177_v21 = vpack.c.bf16 %v2622_v20, %v2621_v18  ;;  %v1108_v22 = vpop.f32.mrb[51].mxu0 }
 0x337   :  { %v1176_v48 = vpack.c.bf16 %v1108_v22, %v1105_v19 }
 0x339   :  { %2403 = vmatprep.subr.bf16.mxu1 %v1176_v48 }
 0x33a   :  { %2404 = vmatpush3.bf16.msra.mxu1 %v1168_v31 }
 0x33b   :  { %2405 = vmatprep.subr.bf16.mxu1 %v1177_v21 }
 0x33e   :  { %2406 = vmatpush3.bf16.msra.mxu1 %v1169_v29 }
 0x343   :  { %v2625_v23 = vpop.f32.mrb[52].mxu0 }
 0x344   :  { %v1121_v24 = vpop.f32.mrb[53].mxu0 }
 0x345   :  { %v2626_v25 = vpop.f32.mrb[54].mxu0 }
 0x346   :  { %v1179_v26 = vpack.c.bf16 %v2626_v25, %v2625_v23  ;;  %v1124_v27 = vpop.f32.mrb[55].mxu0 }
 0x347   :  { %v1178_v28 = vpack.c.bf16 %v1124_v27, %v1121_v24 }
 0x349   :  { %2407 = vmatprep.subr.bf16.mxu1 %v1178_v28 }
 0x34a   :  { %2408 = vmatpush3.bf16.msra.mxu1 %v1170_v60  ;;  %v2826_v60 = vld [vmem:[%s3554_s6 + $0x8] sm:$0xff]  }
 0x34b   :  { %2409 = vmatprep.subr.bf16.mxu1 %v1179_v26 }
 0x34e   :  { %2410 = vmatpush3.bf16.msra.mxu1 %v1171_v35  ;;  %v2825_v35 = vld [vmem:[%s3554_s6] sm:$0xff]  }
 0x34f   :  { %2635 = vmatprep.subr.bf16.mxu0 %v2825_v35 }
 0x350   :  { %2636 = vmatpush3.bf16.msra.mxu0 %v2825_v35 }
 0x351   :  { %2637 = vmatprep.subr.bf16.mxu0 %v2826_v60 }
 0x353   :  { %v2629_v30 = vpop.f32.mrb[56].mxu0 }
 0x354   :  { %v1137_v32 = vpop.f32.mrb[57].mxu0  ;;  %2638 = vmatpush3.bf16.msra.mxu0 %v2826_v60 }
 0x355   :  { %v2630_v33 = vpop.f32.mrb[58].mxu0 }
 0x356   :  { %v1181_v34 = vpack.c.bf16 %v2630_v33, %v2629_v30  ;;  %v1140_v37 = vpop.f32.mrb[59].mxu0 }
 0x357   :  { %v1180_v63 = vpack.c.bf16 %v1140_v37, %v1137_v32 }
 0x359   :  { %2411 = vmatprep.subr.bf16.mxu1 %v1180_v63 }
 0x35a   :  { %2412 = vmatpush3.bf16.msra.mxu1 %v1172_v10  ;;  %v2828_v10 = vld [vmem:[%s3554_s6 + $0x18] sm:$0xff]  }
 0x35b   :  { %2413 = vmatprep.subr.bf16.mxu1 %v1181_v34 }
 0x35e   :  { %2414 = vmatpush3.bf16.msra.mxu1 %v1173_v11  ;;  %v2827_v11 = vld [vmem:[%s3554_s6 + $0x10] sm:$0xff]  }
 0x35f   :  { %2639 = vmatprep.subr.bf16.mxu0 %v2827_v11 }
 0x360   :  { %2640 = vmatpush3.bf16.msra.mxu0 %v2827_v11 }
 0x361   :  { %2641 = vmatprep.subr.bf16.mxu0 %v2828_v10 }
 0x363   :  { %v2633_v29 = vpop.f32.mrb[60].mxu0 }
 0x364   :  { %v1153_v31 = vpop.f32.mrb[61].mxu0  ;;  %2642 = vmatpush3.bf16.msra.mxu0 %v2828_v10 }
 0x365   :  { %v2634_v0 = vpop.f32.mrb[62].mxu0 }
 0x366   :  { %v1183_v3 = vpack.c.bf16 %v2634_v0, %v2633_v29  ;;  %v1156_v4 = vpop.f32.mrb[63].mxu0 }
 0x367   :  { %v1182_v12 = vpack.c.bf16 %v1156_v4, %v1153_v31 }
 0x369   :  { %2415 = vmatprep.subr.bf16.mxu1 %v1182_v12 }
 0x36a   :  { %2416 = vmatpush3.bf16.msra.mxu1 %v1174_v17 }
 0x36b   :  { %2417 = vmatprep.subr.bf16.mxu1 %v1183_v3 }
 0x36e   :  { %2418 = vmatpush3.bf16.msra.mxu1 %v1175_v15 }
 0x371   :  { %1224 = vmatmul.mubr.bf16.vlgmr.msra.gmra.mrb[96].mxu1 %v3096_v36  ;;  %v2829_v36 = vld [vmem:[%s3554_s6 + $0x20] sm:$0xff]  }
 0x372   :  { %1231 = vmatprep.mubr.bf16.mxu1 %v3104_v38  ;;  %2643 = vmatprep.subr.bf16.mxu0 %v2829_v36  ;;  %v2830_v38 = vld [vmem:[%s3554_s6 + $0x28] sm:$0xff]  }
 0x373   :  { %2644 = vmatpush3.bf16.msra.mxu0 %v2829_v36 }
 0x374   :  { %2645 = vmatprep.subr.bf16.mxu0 %v2830_v38 }
 0x377   :  { %2646 = vmatpush3.bf16.msra.mxu0 %v2830_v38 }
 0x379   :  { %1232 = vmatmul.mubr.bf16.gmra.mrb[100].mxu1 %v3111_v39  ;;  %v2831_v39 = vld [vmem:[%s3554_s6 + $0x30] sm:$0xff]  }
 0x37a   :  { %1239 = vmatprep.mubr.bf16.mxu1 %v3116_v40  ;;  %2647 = vmatprep.subr.bf16.mxu0 %v2831_v39  ;;  %v2832_v40 = vld [vmem:[%s3554_s6 + $0x38] sm:$0xff]  }
 0x37b   :  { %2648 = vmatpush3.bf16.msra.mxu0 %v2831_v39 }
 0x37c   :  { %2649 = vmatprep.subr.bf16.mxu0 %v2832_v40 }
 0x37f   :  { %2650 = vmatpush3.bf16.msra.mxu0 %v2832_v40 }
 0x381   :  { %1240 = vmatmul.mubr.bf16.gmra.mrb[104].mxu1 %v3123_v41 }
 0x382   :  { %1247 = vmatprep.mubr.bf16.mxu1 %v3128_v42  ;;  %v3393_v42 = vld [vmem:[%s3553_s5] ss:$0 sm:$0xff] }
 0x389   :  { %1248 = vmatmul.mubr.bf16.gmra.mrb[108].mxu1 %v3135_v43 }
 0x38a   :  { %1255 = vmatprep.mubr.bf16.mxu1 %v3140_v44 }
 0x391   :  { %1256 = vmatmul.mubr.bf16.gmra.mrb[112].mxu1 %v3147_v45 }
 0x392   :  { %1263 = vmatprep.mubr.bf16.mxu1 %v3152_v46 }
 0x399   :  { %1264 = vmatmul.mubr.bf16.gmra.mrb[116].mxu1 %v3159_v47 }
 0x39a   :  { %1271 = vmatprep.mubr.bf16.mxu1 %v3164_v49 }
 0x3a1   :  { %1272 = vmatmul.mubr.bf16.gmra.mrb[120].mxu1 %v3171_v50 }
 0x3a2   :  { %1279 = vmatprep.mubr.bf16.mxu1 %v3176_v51 }
 0x3a9   :  { %1280 = vmatmul.mubr.bf16.gmra.mrb[124].mxu1 %v3183_v52 }
 0x3aa   :  { %1287 = vmatprep.mubr.bf16.mxu1 %v3188_v53 }
 0x3b1   :  { %1288 = vmatmul.mubr.bf16.gmra.mrb[128].mxu1 %v3195_v54 }
 0x3b2   :  { %1295 = vmatprep.mubr.bf16.mxu1 %v3200_v55 }
 0x3b9   :  { %1296 = vmatmul.mubr.bf16.gmra.mrb[132].mxu1 %v3207_v56 }
 0x3ba   :  { %1303 = vmatprep.mubr.bf16.mxu1 %v3212_v57 }
 0x3c1   :  { %1304 = vmatmul.mubr.bf16.gmra.mrb[136].mxu1 %v3219_v58 }
 0x3c2   :  { %1311 = vmatprep.mubr.bf16.mxu1 %v3224_v59 }
 0x3c9   :  { %1312 = vmatmul.mubr.bf16.gmra.mrb[140].mxu1 %v3234_v61 }
 0x3ca   :  { %1319 = vmatprep.mubr.bf16.mxu1 %v3239_v62 }
 0x3d1   :  { %1320 = vmatmul.mubr.bf16.gmra.mrb[144].mxu1 %v3252_v1 }
 0x3d2   :  { %1327 = vmatprep.mubr.bf16.mxu1 %v3257_v2 }
 0x3d9   :  { %1328 = vmatmul.mubr.bf16.gmra.mrb[148].mxu1 %v3270_v5 }
 0x3da   :  { %1335 = vmatprep.mubr.bf16.mxu1 %v3275_v6 }
 0x3e1   :  { %1336 = vmatmul.mubr.bf16.gmra.mrb[152].mxu1 %v3282_v7 }
 0x3e2   :  { %1343 = vmatprep.mubr.bf16.mxu1 %v3287_v8 }
 0x3e9   :  { %1344 = vmatmul.mubr.bf16.gmra.mrb[156].mxu1 %v3294_v9 }
 0x444   :  { %v2419_v41 = vpop.f32.mrb[96].mxu1 }
 0x445   :  { %v2420_v43 = vpop.f32.mrb[97].mxu1 }
 0x446   :  { %v2421_v44 = vadd.f32 %v2420_v43, %v2419_v41  ;;  %v2422_v45 = vpop.f32.mrb[98].mxu1 }
 0x447   :  { %v2423_v46 = vpop.f32.mrb[99].mxu1 }
 0x448   :  { %v1226_v47 = vadd.f32 %v2421_v44, %v3393_v42  ;;  %v2424_v49 = vadd.f32 %v2423_v46, %v2422_v45 }
 0x44a   :  { %v1229_v50 = vadd.f32 %v2424_v49, %v3393_v42  ;;  %v1352_v51 = vmax.f32 %v1226_v47, 0.0 }
 0x44c   :  { %v1353_v52 = vmax.f32 %v1229_v50, 0.0  ;;  %v2425_v53 = vpop.f32.mrb[100].mxu1 }
 0x44d   :  { %v2426_v54 = vpop.f32.mrb[101].mxu1 }
 0x44e   :  { %v2427_v55 = vadd.f32 %v2426_v54, %v2425_v53  ;;  %v2428_v56 = vpop.f32.mrb[102].mxu1  ;;  %v1384_v57 = vpack.c.bf16 %v1353_v52, %v1352_v51 }
 0x44f   :  { %v2429_v58 = vpop.f32.mrb[103].mxu1 }
 0x450   :  { %v1234_v59 = vadd.f32 %v2427_v55, %v3393_v42  ;;  %v2430_v61 = vadd.f32 %v2429_v58, %v2428_v56  ;;  %2651 = vmatprep.mubr.bf16.mxu0 %v1384_v57 }
 0x452   :  { %v1237_v62 = vadd.f32 %v2430_v61, %v3393_v42  ;;  %v1354_v1 = vmax.f32 %v1234_v59, 0.0 }
 0x454   :  { %v1355_v2 = vmax.f32 %v1237_v62, 0.0  ;;  %v2431_v5 = vpop.f32.mrb[104].mxu1 }
 0x455   :  { %v2432_v6 = vpop.f32.mrb[105].mxu1 }
 0x456   :  { %v1385_v7 = vpack.c.bf16 %v1355_v2, %v1354_v1  ;;  %v2433_v8 = vadd.f32 %v2432_v6, %v2431_v5  ;;  %v2434_v9 = vpop.f32.mrb[106].mxu1 }
 0x457   :  { %v2435_v13 = vpop.f32.mrb[107].mxu1 }
 0x458   :  { %v1242_v14 = vadd.f32 %v2433_v8, %v3393_v42  ;;  %v2436_v15 = vadd.f32 %v2435_v13, %v2434_v9  ;;  %2652 = vmatmul.mubr.bf16.vlgmr.msra.gmra.mrb[64].mxu0 %v1385_v7 }
 0x45a   :  { %v1245_v16 = vadd.f32 %v2436_v15, %v3393_v42  ;;  %v1356_v17 = vmax.f32 %v1242_v14, 0.0 }
 0x45c   :  { %v1357_v18 = vmax.f32 %v1245_v16, 0.0  ;;  %v2437_v19 = vpop.f32.mrb[108].mxu1 }
 0x45d   :  { %v2438_v20 = vpop.f32.mrb[109].mxu1 }
 0x45e   :  { %v2439_v21 = vadd.f32 %v2438_v20, %v2437_v19  ;;  %v2440_v22 = vpop.f32.mrb[110].mxu1  ;;  %v1386_v48 = vpack.c.bf16 %v1357_v18, %v1356_v17 }
 0x45f   :  { %v2441_v23 = vpop.f32.mrb[111].mxu1 }
 0x460   :  { %v1250_v24 = vadd.f32 %v2439_v21, %v3393_v42  ;;  %v2442_v25 = vadd.f32 %v2441_v23, %v2440_v22  ;;  %2655 = vmatprep.mubr.bf16.mxu0 %v1386_v48 }
 0x462   :  { %v1253_v26 = vadd.f32 %v2442_v25, %v3393_v42  ;;  %v1358_v27 = vmax.f32 %v1250_v24, 0.0 }
 0x464   :  { %v1359_v28 = vmax.f32 %v1253_v26, 0.0  ;;  %v2443_v30 = vpop.f32.mrb[112].mxu1 }
 0x465   :  { %v2444_v32 = vpop.f32.mrb[113].mxu1 }
 0x466   :  { %v2445_v33 = vadd.f32 %v2444_v32, %v2443_v30  ;;  %v2446_v34 = vpop.f32.mrb[114].mxu1  ;;  %v1387_v37 = vpack.c.bf16 %v1359_v28, %v1358_v27 }
 0x467   :  { %v2447_v63 = vpop.f32.mrb[115].mxu1 }
 0x468   :  { %v1258_v29 = vadd.f32 %v2445_v33, %v3393_v42  ;;  %v2448_v31 = vadd.f32 %v2447_v63, %v2446_v34  ;;  %2656 = vmatmul.mubr.bf16.gmra.mrb[68].mxu0 %v1387_v37 }
 0x46a   :  { %v1261_v0 = vadd.f32 %v2448_v31, %v3393_v42  ;;  %v1360_v3 = vmax.f32 %v1258_v29, 0.0 }
 0x46c   :  { %v1361_v4 = vmax.f32 %v1261_v0, 0.0  ;;  %v2449_v12 = vpop.f32.mrb[116].mxu1 }
 0x46d   :  { %v2450_v35 = vpop.f32.mrb[117].mxu1 }
 0x46e   :  { %v2451_v60 = vadd.f32 %v2450_v35, %v2449_v12  ;;  %v2452_v11 = vpop.f32.mrb[118].mxu1  ;;  %v1388_v10 = vpack.c.bf16 %v1361_v4, %v1360_v3 }
 0x46f   :  { %v2453_v36 = vpop.f32.mrb[119].mxu1 }
 0x470   :  { %v1266_v38 = vadd.f32 %v2451_v60, %v3393_v42  ;;  %v2454_v39 = vadd.f32 %v2453_v36, %v2452_v11  ;;  %2659 = vmatprep.mubr.bf16.mxu0 %v1388_v10 }
 0x472   :  { %v1269_v40 = vadd.f32 %v2454_v39, %v3393_v42  ;;  %v1362_v41 = vmax.f32 %v1266_v38, 0.0 }
 0x474   :  { %v1363_v43 = vmax.f32 %v1269_v40, 0.0  ;;  %v2455_v44 = vpop.f32.mrb[120].mxu1 }
 0x475   :  { %v2456_v45 = vpop.f32.mrb[121].mxu1 }
 0x476   :  { %v2457_v46 = vadd.f32 %v2456_v45, %v2455_v44  ;;  %v2458_v47 = vpop.f32.mrb[122].mxu1  ;;  %v1389_v49 = vpack.c.bf16 %v1363_v43, %v1362_v41 }
 0x477   :  { %v2459_v50 = vpop.f32.mrb[123].mxu1 }
 0x478   :  { %v1274_v51 = vadd.f32 %v2457_v46, %v3393_v42  ;;  %v2460_v52 = vadd.f32 %v2459_v50, %v2458_v47  ;;  %2660 = vmatmul.mubr.bf16.gmra.mrb[72].mxu0 %v1389_v49 }
 0x47a   :  { %v1277_v53 = vadd.f32 %v2460_v52, %v3393_v42  ;;  %v1364_v54 = vmax.f32 %v1274_v51, 0.0 }
 0x47c   :  { %v1365_v55 = vmax.f32 %v1277_v53, 0.0  ;;  %v2461_v56 = vpop.f32.mrb[124].mxu1 }
 0x47d   :  { %v2462_v57 = vpop.f32.mrb[125].mxu1 }
 0x47e   :  { %v2463_v58 = vadd.f32 %v2462_v57, %v2461_v56  ;;  %v2464_v59 = vpop.f32.mrb[126].mxu1  ;;  %v1390_v61 = vpack.c.bf16 %v1365_v55, %v1364_v54 }
 0x47f   :  { %v2465_v62 = vpop.f32.mrb[127].mxu1 }
 0x480   :  { %v1282_v1 = vadd.f32 %v2463_v58, %v3393_v42  ;;  %v2466_v2 = vadd.f32 %v2465_v62, %v2464_v59  ;;  %2663 = vmatprep.mubr.bf16.mxu0 %v1390_v61 }
 0x482   :  { %v1285_v5 = vadd.f32 %v2466_v2, %v3393_v42  ;;  %v1366_v6 = vmax.f32 %v1282_v1, 0.0 }
 0x484   :  { %v1367_v7 = vmax.f32 %v1285_v5, 0.0  ;;  %v2467_v8 = vpop.f32.mrb[128].mxu1 }
 0x485   :  { %v2468_v9 = vpop.f32.mrb[129].mxu1 }
 0x486   :  { %v2469_v13 = vadd.f32 %v2468_v9, %v2467_v8  ;;  %v2470_v14 = vpop.f32.mrb[130].mxu1  ;;  %v1391_v15 = vpack.c.bf16 %v1367_v7, %v1366_v6 }
 0x487   :  { %v2471_v16 = vpop.f32.mrb[131].mxu1 }
 0x488   :  { %v1290_v17 = vadd.f32 %v2469_v13, %v3393_v42  ;;  %v2472_v18 = vadd.f32 %v2471_v16, %v2470_v14  ;;  %2664 = vmatmul.mubr.bf16.gmra.mrb[76].mxu0 %v1391_v15 }
 0x48a   :  { %v1293_v19 = vadd.f32 %v2472_v18, %v3393_v42  ;;  %v1368_v20 = vmax.f32 %v1290_v17, 0.0 }
 0x48c   :  { %v1369_v21 = vmax.f32 %v1293_v19, 0.0  ;;  %v2473_v22 = vpop.f32.mrb[132].mxu1 }
 0x48d   :  { %v2474_v48 = vpop.f32.mrb[133].mxu1 }
 0x48e   :  { %v2475_v23 = vadd.f32 %v2474_v48, %v2473_v22  ;;  %v2476_v24 = vpop.f32.mrb[134].mxu1  ;;  %v1392_v25 = vpack.c.bf16 %v1369_v21, %v1368_v20 }
 0x48f   :  { %v2477_v26 = vpop.f32.mrb[135].mxu1 }
 0x490   :  { %v1298_v27 = vadd.f32 %v2475_v23, %v3393_v42  ;;  %v2478_v28 = vadd.f32 %v2477_v26, %v2476_v24  ;;  %2667 = vmatprep.mubr.bf16.mxu0 %v1392_v25 }
 0x492   :  { %v1301_v30 = vadd.f32 %v2478_v28, %v3393_v42  ;;  %v1370_v32 = vmax.f32 %v1298_v27, 0.0 }
 0x494   :  { %v1371_v33 = vmax.f32 %v1301_v30, 0.0  ;;  %v2479_v34 = vpop.f32.mrb[136].mxu1 }
 0x495   :  { %v2480_v37 = vpop.f32.mrb[137].mxu1 }
 0x496   :  { %v1393_v63 = vpack.c.bf16 %v1371_v33, %v1370_v32  ;;  %v2481_v29 = vadd.f32 %v2480_v37, %v2479_v34  ;;  %v2482_v31 = vpop.f32.mrb[138].mxu1 }
 0x497   :  { %v2483_v0 = vpop.f32.mrb[139].mxu1 }
 0x498   :  { %2668 = vmatmul.mubr.bf16.gmra.mrb[80].mxu0 %v1393_v63  ;;  %v1306_v3 = vadd.f32 %v2481_v29, %v3393_v42  ;;  %v2484_v4 = vadd.f32 %v2483_v0, %v2482_v31  ;;  %v3430_v31 = vld [vmem:[%s3555_s7] ss:$0 sm:$0xff]  ;;  %s2881_s7 = smov [#allocation5]  }
 0x499   :  { %s2039_s22 = sshll.u32 %s2881_s7, 4  ;;  %s2040_s22 = int_to_ptr.vmem [resolvable:$true] %s2039_s22 }
 0x49a   :  { %v1309_v12 = vadd.f32 %v2484_v4, %v3393_v42  ;;  %v1372_v35 = vmax.f32 %v1306_v3, 0.0  ;;  %s2833_s23 = scalar_lea.vmem %s2040_s22, 4096  ;;  %p2838_p1 = scmp.lt.s32.totalorder %s2040_s22, %s2040_s22 }
 0x49b   :  { %p2834_p0 = scmp.ne.s32.totalorder %s2040_s22, %s2833_s23  ;;  %p2839_p2 = scmp.lt.s32.totalorder %s2833_s23, %s2833_s23 }
 0x49c   :  { %v1373_v60 = vmax.f32 %v1309_v12, 0.0  ;;  %v2485_v11 = vpop.f32.mrb[140].mxu1 }
 0x49d   :  { %v2486_v10 = vpop.f32.mrb[141].mxu1  ;;  %p2840_p3 = por %p2839_p2, %p2838_p1 }
 0x49e   :  { %v2487_v36 = vadd.f32 %v2486_v10, %v2485_v11  ;;  %v2488_v38 = vpop.f32.mrb[142].mxu1  ;;  %v1394_v39 = vpack.c.bf16 %v1373_v60, %v1372_v35 }
 0x49f   :  { %v2489_v40 = vpop.f32.mrb[143].mxu1  ;;  %p2841_p4 = pnand %p2840_p3, %p2834_p0 }
 0x4a0   :  { %v1314_v41 = vadd.f32 %v2487_v36, %v3393_v42  ;;  %v2490_v43 = vadd.f32 %v2489_v40, %v2488_v38  ;;  %2671 = vmatprep.mubr.bf16.mxu0 %v1394_v39 }
 0x4a2   :  { %v1317_v44 = vadd.f32 %v2490_v43, %v3393_v42  ;;  %v1374_v45 = vmax.f32 %v1314_v41, 0.0 }
 0x4a4   :  { %v1375_v46 = vmax.f32 %v1317_v44, 0.0  ;;  %v2491_v47 = vpop.f32.mrb[144].mxu1 }
 0x4a5   :  { %v2492_v49 = vpop.f32.mrb[145].mxu1 }
 0x4a6   :  { %v1395_v50 = vpack.c.bf16 %v1375_v46, %v1374_v45  ;;  %v2493_v51 = vadd.f32 %v2492_v49, %v2491_v47  ;;  %v2494_v52 = vpop.f32.mrb[146].mxu1 }
 0x4a7   :  { %v2495_v53 = vpop.f32.mrb[147].mxu1 }
 0x4a8   :  { %2672 = vmatmul.mubr.bf16.gmra.mrb[84].mxu0 %v1395_v50  ;;  %v1322_v54 = vadd.f32 %v2493_v51, %v3393_v42  ;;  %v2496_v55 = vadd.f32 %v2495_v53, %v2494_v52 }
 0x4aa   :  { %v1325_v56 = vadd.f32 %v2496_v55, %v3393_v42  ;;  %v1376_v57 = vmax.f32 %v1322_v54, 0.0 }
 0x4ac   :  { %v1377_v58 = vmax.f32 %v1325_v56, 0.0  ;;  %v2497_v59 = vpop.f32.mrb[148].mxu1 }
 0x4ad   :  { %v2498_v61 = vpop.f32.mrb[149].mxu1 }
 0x4ae   :  { %v2499_v62 = vadd.f32 %v2498_v61, %v2497_v59  ;;  %v2500_v1 = vpop.f32.mrb[150].mxu1  ;;  %v1396_v2 = vpack.c.bf16 %v1377_v58, %v1376_v57 }
 0x4af   :  { %v2501_v5 = vpop.f32.mrb[151].mxu1 }
 0x4b0   :  { %v1330_v6 = vadd.f32 %v2499_v62, %v3393_v42  ;;  %v2502_v7 = vadd.f32 %v2501_v5, %v2500_v1  ;;  %2675 = vmatprep.mubr.bf16.mxu0 %v1396_v2 }
 0x4b2   :  { %v1333_v8 = vadd.f32 %v2502_v7, %v3393_v42  ;;  %v1378_v9 = vmax.f32 %v1330_v6, 0.0 }
 0x4b4   :  { %v1379_v13 = vmax.f32 %v1333_v8, 0.0  ;;  %v2503_v14 = vpop.f32.mrb[152].mxu1 }
 0x4b5   :  { %v2504_v15 = vpop.f32.mrb[153].mxu1 }
 0x4b6   :  { %v1397_v16 = vpack.c.bf16 %v1379_v13, %v1378_v9  ;;  %v2505_v17 = vadd.f32 %v2504_v15, %v2503_v14  ;;  %v2506_v18 = vpop.f32.mrb[154].mxu1 }
 0x4b7   :  { %v2507_v19 = vpop.f32.mrb[155].mxu1 }
 0x4b8   :  { %2676 = vmatmul.mubr.bf16.gmra.mrb[88].mxu0 %v1397_v16  ;;  %v1338_v20 = vadd.f32 %v2505_v17, %v3393_v42  ;;  %v2508_v21 = vadd.f32 %v2507_v19, %v2506_v18 }
 0x4ba   :  { %v1341_v22 = vadd.f32 %v2508_v21, %v3393_v42  ;;  %v1380_v48 = vmax.f32 %v1338_v20, 0.0 }
 0x4bc   :  { %v1381_v23 = vmax.f32 %v1341_v22, 0.0  ;;  %v2509_v24 = vpop.f32.mrb[156].mxu1 }
 0x4bd   :  { %v2510_v25 = vpop.f32.mrb[157].mxu1 }
 0x4be   :  { %v2511_v26 = vadd.f32 %v2510_v25, %v2509_v24  ;;  %v2512_v27 = vpop.f32.mrb[158].mxu1  ;;  %v1398_v28 = vpack.c.bf16 %v1381_v23, %v1380_v48 }
 0x4bf   :  { %v2513_v30 = vpop.f32.mrb[159].mxu1 }
 0x4c0   :  { %v1346_v32 = vadd.f32 %v2511_v26, %v3393_v42  ;;  %v2514_v33 = vadd.f32 %v2513_v30, %v2512_v27  ;;  %2679 = vmatprep.mubr.bf16.mxu0 %v1398_v28 }
 0x4c2   :  { %v1349_v34 = vadd.f32 %v2514_v33, %v3393_v42  ;;  %v1382_v37 = vmax.f32 %v1346_v32, 0.0 }
 0x4c4   :  { %v1383_v63 = vmax.f32 %v1349_v34, 0.0 }
 0x4c6   :  { %v1399_v29 = vpack.c.bf16 %v1383_v63, %v1382_v37 }
 0x4c8   :  { %2680 = vmatmul.mubr.bf16.gmra.mrb[92].mxu0 %v1399_v29 }
 0x52b   :  { %v2653_v0 = vpop.f32.mrb[64].mxu0 }
 0x52c   :  { %v1514_v3 = vadd.f32 %v2653_v0, %v3430_v31  ;;  %v1505_v4 = vpop.f32.mrb[65].mxu0 }
 0x52d   :  { %v1506_v12 = vadd.f32 %v3430_v31, %v1505_v4  ;;  %v2654_v35 = vpop.f32.mrb[66].mxu0 }
 0x52e   :  { %v1634_v60 = vmax.f32 %v1514_v3, 0.0  ;;  %v1517_v11 = vadd.f32 %v2654_v35, %v3430_v31  ;;  %v1508_v42 = vpop.f32.mrb[67].mxu0 }
 0x52f   :  { %v1632_v10 = vmax.f32 %v1506_v12, 0.0  ;;  %v1509_v36 = vadd.f32 %v3430_v31, %v1508_v42 }
 0x530   :  { %1666 = vst [vmem:[#allocation5 + $0x10] sm:$0xff] %v1634_v60  ;;  %v1635_v38 = vmax.f32 %v1517_v11, 0.0 }
 0x531   :  { %1664 = vst [vmem:[#allocation5] sm:$0xff] %v1632_v10  ;;  %v1633_v39 = vmax.f32 %v1509_v36, 0.0 }
 0x532   :  { %1667 = vst [vmem:[#allocation5 + $0x18] sm:$0xff] %v1635_v38  ;;  %v3436_v40 = vpack.c.bf16 %v1635_v38, %v1634_v60 }
 0x533   :  { %1665 = vst [vmem:[#allocation5 + $0x8] sm:$0xff] %v1633_v39  ;;  %v3438_v41 = vpack.c.bf16 %v1633_v39, %v1632_v10 }
 0x535   :  { %2555 = vmatprep.mubr.bf16.mxu0 %v3438_v41 }
 0x53b   :  { %v2657_v43 = vpop.f32.mrb[68].mxu0 }
 0x53c   :  { %v1530_v44 = vadd.f32 %v2657_v43, %v3430_v31  ;;  %v1521_v45 = vpop.f32.mrb[69].mxu0 }
 0x53d   :  { %v1522_v46 = vadd.f32 %v3430_v31, %v1521_v45  ;;  %v2658_v47 = vpop.f32.mrb[70].mxu0 }
 0x53e   :  { %v1638_v49 = vmax.f32 %v1530_v44, 0.0  ;;  %v1533_v50 = vadd.f32 %v2658_v47, %v3430_v31  ;;  %v1524_v51 = vpop.f32.mrb[71].mxu0 }
 0x53f   :  { %v1636_v52 = vmax.f32 %v1522_v46, 0.0  ;;  %v1525_v53 = vadd.f32 %v3430_v31, %v1524_v51 }
 0x540   :  { %1670 = vst [vmem:[#allocation5 + $0x30] sm:$0xff] %v1638_v49  ;;  %v1639_v54 = vmax.f32 %v1533_v50, 0.0 }
 0x541   :  { %1668 = vst [vmem:[#allocation5 + $0x20] sm:$0xff] %v1636_v52  ;;  %v1637_v55 = vmax.f32 %v1525_v53, 0.0 }
 0x542   :  { %1671 = vst [vmem:[#allocation5 + $0x38] sm:$0xff] %v1639_v54  ;;  %v3445_v56 = vpack.c.bf16 %v1639_v54, %v1638_v49 }
 0x543   :  { %1669 = vst [vmem:[#allocation5 + $0x28] sm:$0xff] %v1637_v55  ;;  %v3447_v57 = vpack.c.bf16 %v1637_v55, %v1636_v52 }
 0x54b   :  { %v2661_v58 = vpop.f32.mrb[72].mxu0 }
 0x54c   :  { %v1546_v59 = vadd.f32 %v2661_v58, %v3430_v31  ;;  %v1537_v61 = vpop.f32.mrb[73].mxu0 }
 0x54d   :  { %v1538_v62 = vadd.f32 %v3430_v31, %v1537_v61  ;;  %v2662_v1 = vpop.f32.mrb[74].mxu0 }
 0x54e   :  { %v1642_v2 = vmax.f32 %v1546_v59, 0.0  ;;  %v1549_v5 = vadd.f32 %v2662_v1, %v3430_v31  ;;  %v1540_v6 = vpop.f32.mrb[75].mxu0 }
 0x54f   :  { %v1640_v7 = vmax.f32 %v1538_v62, 0.0  ;;  %v1541_v8 = vadd.f32 %v3430_v31, %v1540_v6 }
 0x550   :  { %1674 = vst [vmem:[#allocation5 + $0x50] sm:$0xff] %v1642_v2  ;;  %v1643_v9 = vmax.f32 %v1549_v5, 0.0 }
 0x551   :  { %1672 = vst [vmem:[#allocation5 + $0x40] sm:$0xff] %v1640_v7  ;;  %v1641_v13 = vmax.f32 %v1541_v8, 0.0 }
 0x552   :  { %1675 = vst [vmem:[#allocation5 + $0x58] sm:$0xff] %v1643_v9  ;;  %v3453_v14 = vpack.c.bf16 %v1643_v9, %v1642_v2 }
 0x553   :  { %1673 = vst [vmem:[#allocation5 + $0x48] sm:$0xff] %v1641_v13  ;;  %v3455_v15 = vpack.c.bf16 %v1641_v13, %v1640_v7 }
 0x55b   :  { %v2665_v16 = vpop.f32.mrb[76].mxu0 }
 0x55c   :  { %v1562_v17 = vadd.f32 %v2665_v16, %v3430_v31  ;;  %v1553_v18 = vpop.f32.mrb[77].mxu0 }
 0x55d   :  { %v1554_v19 = vadd.f32 %v3430_v31, %v1553_v18  ;;  %v2666_v20 = vpop.f32.mrb[78].mxu0 }
 0x55e   :  { %v1646_v21 = vmax.f32 %v1562_v17, 0.0  ;;  %v1565_v22 = vadd.f32 %v2666_v20, %v3430_v31  ;;  %v1556_v48 = vpop.f32.mrb[79].mxu0 }
 0x55f   :  { %v1644_v23 = vmax.f32 %v1554_v19, 0.0  ;;  %v1557_v24 = vadd.f32 %v3430_v31, %v1556_v48 }
 0x560   :  { %1678 = vst [vmem:[#allocation5 + $0x70] sm:$0xff] %v1646_v21  ;;  %v1647_v25 = vmax.f32 %v1565_v22, 0.0 }
 0x561   :  { %1676 = vst [vmem:[#allocation5 + $0x60] sm:$0xff] %v1644_v23  ;;  %v1645_v26 = vmax.f32 %v1557_v24, 0.0 }
 0x562   :  { %1679 = vst [vmem:[#allocation5 + $0x78] sm:$0xff] %v1647_v25  ;;  %v3461_v27 = vpack.c.bf16 %v1647_v25, %v1646_v21 }
 0x563   :  { %1677 = vst [vmem:[#allocation5 + $0x68] sm:$0xff] %v1645_v26  ;;  %v3463_v28 = vpack.c.bf16 %v1645_v26, %v1644_v23 }
 0x56b   :  { %v2669_v30 = vpop.f32.mrb[80].mxu0 }
 0x56c   :  { %v1578_v32 = vadd.f32 %v2669_v30, %v3430_v31  ;;  %v1569_v33 = vpop.f32.mrb[81].mxu0 }
 0x56d   :  { %v1570_v34 = vadd.f32 %v3430_v31, %v1569_v33  ;;  %v2670_v37 = vpop.f32.mrb[82].mxu0 }
 0x56e   :  { %v1650_v63 = vmax.f32 %v1578_v32, 0.0  ;;  %v1581_v29 = vadd.f32 %v2670_v37, %v3430_v31  ;;  %v1572_v0 = vpop.f32.mrb[83].mxu0 }
 0x56f   :  { %v1648_v3 = vmax.f32 %v1570_v34, 0.0  ;;  %v1573_v4 = vadd.f32 %v3430_v31, %v1572_v0 }
 0x570   :  { %1682 = vst [vmem:[#allocation5 + $0x90] sm:$0xff] %v1650_v63  ;;  %v1651_v12 = vmax.f32 %v1581_v29, 0.0 }
 0x571   :  { %1680 = vst [vmem:[#allocation5 + $0x80] sm:$0xff] %v1648_v3  ;;  %v1649_v35 = vmax.f32 %v1573_v4, 0.0 }
 0x572   :  { %1683 = vst [vmem:[#allocation5 + $0x98] sm:$0xff] %v1651_v12  ;;  %v3469_v60 = vpack.c.bf16 %v1651_v12, %v1650_v63 }
 0x573   :  { %1681 = vst [vmem:[#allocation5 + $0x88] sm:$0xff] %v1649_v35  ;;  %v3471_v11 = vpack.c.bf16 %v1649_v35, %v1648_v3 }
 0x575   :  { %2539 = vmatprep.subr.bf16.mxu0 %v3471_v11 }
 0x576   :  { %2540 = vmatpush3.bf16.xpose.msra.mxu0 %v3438_v41 }
 0x577   :  { %2541 = vmatprep.subr.bf16.mxu0 %v3469_v60 }
 0x57b   :  { %v2673_v42 = vpop.f32.mrb[84].mxu0 }
 0x57c   :  { %v1594_v10 = vadd.f32 %v2673_v42, %v3430_v31  ;;  %v1585_v36 = vpop.f32.mrb[85].mxu0 }
 0x57d   :  { %v1586_v38 = vadd.f32 %v3430_v31, %v1585_v36  ;;  %v2674_v39 = vpop.f32.mrb[86].mxu0 }
 0x57e   :  { %v1654_v43 = vmax.f32 %v1594_v10, 0.0  ;;  %v1597_v44 = vadd.f32 %v2674_v39, %v3430_v31  ;;  %v1588_v45 = vpop.f32.mrb[87].mxu0  ;;  %2542 = vmatpush3.bf16.xpose.msra.mxu0 %v3436_v40 }
 0x57f   :  { %v1652_v46 = vmax.f32 %v1586_v38, 0.0  ;;  %v1589_v47 = vadd.f32 %v3430_v31, %v1588_v45 }
 0x580   :  { %1686 = vst [vmem:[#allocation5 + $0xb0] sm:$0xff] %v1654_v43  ;;  %v1655_v49 = vmax.f32 %v1597_v44, 0.0 }
 0x581   :  { %1684 = vst [vmem:[#allocation5 + $0xa0] sm:$0xff] %v1652_v46  ;;  %v1653_v50 = vmax.f32 %v1589_v47, 0.0 }
 0x582   :  { %1687 = vst [vmem:[#allocation5 + $0xb8] sm:$0xff] %v1655_v49  ;;  %v3481_v51 = vpack.c.bf16 %v1655_v49, %v1654_v43 }
 0x583   :  { %1685 = vst [vmem:[#allocation5 + $0xa8] sm:$0xff] %v1653_v50  ;;  %v3483_v52 = vpack.c.bf16 %v1653_v50, %v1652_v46 }
 0x585   :  { %2543 = vmatprep.subr.bf16.mxu0 %v3483_v52 }
 0x586   :  { %2544 = vmatpush3.bf16.xpose.msra.mxu0 %v3447_v57 }
 0x587   :  { %2545 = vmatprep.subr.bf16.mxu0 %v3481_v51 }
 0x58b   :  { %v2677_v53 = vpop.f32.mrb[88].mxu0 }
 0x58c   :  { %v1610_v54 = vadd.f32 %v2677_v53, %v3430_v31  ;;  %v1601_v55 = vpop.f32.mrb[89].mxu0 }
 0x58d   :  { %v1602_v58 = vadd.f32 %v3430_v31, %v1601_v55  ;;  %v2678_v59 = vpop.f32.mrb[90].mxu0 }
 0x58e   :  { %v1658_v61 = vmax.f32 %v1610_v54, 0.0  ;;  %v1613_v62 = vadd.f32 %v2678_v59, %v3430_v31  ;;  %v1604_v1 = vpop.f32.mrb[91].mxu0  ;;  %2546 = vmatpush3.bf16.xpose.msra.mxu0 %v3445_v56 }
 0x58f   :  { %v1656_v2 = vmax.f32 %v1602_v58, 0.0  ;;  %v1605_v5 = vadd.f32 %v3430_v31, %v1604_v1 }
 0x590   :  { %1690 = vst [vmem:[#allocation5 + $0xd0] sm:$0xff] %v1658_v61  ;;  %v1659_v6 = vmax.f32 %v1613_v62, 0.0 }
 0x591   :  { %1688 = vst [vmem:[#allocation5 + $0xc0] sm:$0xff] %v1656_v2  ;;  %v1657_v7 = vmax.f32 %v1605_v5, 0.0 }
 0x592   :  { %1691 = vst [vmem:[#allocation5 + $0xd8] sm:$0xff] %v1659_v6  ;;  %v1709_v8 = vpack.c.bf16 %v1659_v6, %v1658_v61 }
 0x593   :  { %1689 = vst [vmem:[#allocation5 + $0xc8] sm:$0xff] %v1657_v7  ;;  %v1708_v9 = vpack.c.bf16 %v1657_v7, %v1656_v2 }
 0x595   :  { %2547 = vmatprep.subr.bf16.mxu0 %v1708_v9 }
 0x596   :  { %2548 = vmatpush3.bf16.xpose.msra.mxu0 %v3455_v15 }
 0x597   :  { %2549 = vmatprep.subr.bf16.mxu0 %v1709_v8 }
 0x59b   :  { %v2681_v13 = vpop.f32.mrb[92].mxu0 }
 0x59c   :  { %v1626_v16 = vadd.f32 %v2681_v13, %v3430_v31  ;;  %v1617_v17 = vpop.f32.mrb[93].mxu0 }
 0x59d   :  { %v1618_v18 = vadd.f32 %v3430_v31, %v1617_v17  ;;  %v2682_v19 = vpop.f32.mrb[94].mxu0 }
 0x59e   :  { %v1662_v20 = vmax.f32 %v1626_v16, 0.0  ;;  %v1629_v21 = vadd.f32 %v2682_v19, %v3430_v31  ;;  %v1620_v22 = vpop.f32.mrb[95].mxu0  ;;  %2550 = vmatpush3.bf16.xpose.msra.mxu0 %v3453_v14 }
 0x59f   :  { %v1660_v48 = vmax.f32 %v1618_v18, 0.0  ;;  %v1621_v23 = vadd.f32 %v3430_v31, %v1620_v22 }
 0x5a0   :  { %1694 = vst [vmem:[#allocation5 + $0xf0] sm:$0xff] %v1662_v20  ;;  %v1663_v24 = vmax.f32 %v1629_v21, 0.0 }
 0x5a1   :  { %1692 = vst [vmem:[#allocation5 + $0xe0] sm:$0xff] %v1660_v48  ;;  %v1661_v25 = vmax.f32 %v1621_v23, 0.0 }
 0x5a2   :  { %1695 = vst [vmem:[#allocation5 + $0xf8] sm:$0xff] %v1663_v24  ;;  %v1711_v26 = vpack.c.bf16 %v1663_v24, %v1662_v20 }
 0x5a3   :  { %1693 = vst [vmem:[#allocation5 + $0xe8] sm:$0xff] %v1661_v25  ;;  %v1710_v30 = vpack.c.bf16 %v1661_v25, %v1660_v48 }
 0x5a5   :  { %2551 = vmatprep.subr.bf16.mxu0 %v1710_v30 }
 0x5a6   :  { %2552 = vmatpush3.bf16.xpose.msra.mxu0 %v3463_v28 }
 0x5a7   :  { %2553 = vmatprep.subr.bf16.mxu0 %v1711_v26 }
 0x5ae   :  { %2554 = vmatpush3.bf16.xpose.msra.mxu0 %v3461_v27 }
 0x5b5   :  { %2556 = vmatmul.mubr.bf16.vlgmr.msra.gmra.mrb[96].mxu0 %v3438_v41 }
 0x5b6   :  { %2557 = vmatprep.mubr.bf16.mxu0 %v3436_v40 }
 0x5bd   :  { %2558 = vmatmul.mubr.bf16.gmra.mrb[100].mxu0 %v3436_v40 }
 0x5be   :  { %2559 = vmatprep.mubr.bf16.mxu0 %v3447_v57 }
 0x5c5   :  { %2560 = vmatmul.mubr.bf16.gmra.mrb[104].mxu0 %v3447_v57 }
 0x5c6   :  { %2561 = vmatprep.mubr.bf16.mxu0 %v3445_v56 }
 0x5cd   :  { %2562 = vmatmul.mubr.bf16.gmra.mrb[108].mxu0 %v3445_v56 }
 0x5ce   :  { %2563 = vmatprep.mubr.bf16.mxu0 %v3455_v15 }
 0x5d5   :  { %2564 = vmatmul.mubr.bf16.gmra.mrb[112].mxu0 %v3455_v15 }
 0x5d6   :  { %2565 = vmatprep.mubr.bf16.mxu0 %v3453_v14 }
 0x5dd   :  { %2566 = vmatmul.mubr.bf16.gmra.mrb[116].mxu0 %v3453_v14 }
 0x5de   :  { %2567 = vmatprep.mubr.bf16.mxu0 %v3463_v28 }
 0x5e5   :  { %2568 = vmatmul.mubr.bf16.gmra.mrb[120].mxu0 %v3463_v28 }
 0x5e6   :  { %2569 = vmatprep.mubr.bf16.mxu0 %v3461_v27 }
 0x5ed   :  { %2570 = vmatmul.mubr.bf16.gmra.mrb[124].mxu0 %v3461_v27 }
 0x5ee   :  { %2571 = vmatprep.mubr.bf16.mxu0 %v3471_v11 }
 0x5f5   :  { %2572 = vmatmul.mubr.bf16.gmra.mrb[128].mxu0 %v3471_v11 }
 0x5f6   :  { %2573 = vmatprep.mubr.bf16.mxu0 %v3469_v60 }
 0x5fd   :  { %2574 = vmatmul.mubr.bf16.gmra.mrb[132].mxu0 %v3469_v60 }
 0x5fe   :  { %2575 = vmatprep.mubr.bf16.mxu0 %v3483_v52 }
 0x605   :  { %2576 = vmatmul.mubr.bf16.gmra.mrb[136].mxu0 %v3483_v52 }
 0x606   :  { %2577 = vmatprep.mubr.bf16.mxu0 %v3481_v51 }
 0x60d   :  { %2578 = vmatmul.mubr.bf16.gmra.mrb[140].mxu0 %v3481_v51 }
 0x60e   :  { %2579 = vmatprep.mubr.bf16.mxu0 %v1708_v9 }
 0x615   :  { %2580 = vmatmul.mubr.bf16.gmra.mrb[144].mxu0 %v1708_v9 }
 0x616   :  { %2581 = vmatprep.mubr.bf16.mxu0 %v1709_v8 }
 0x61d   :  { %2582 = vmatmul.mubr.bf16.gmra.mrb[148].mxu0 %v1709_v8 }
 0x61e   :  { %2583 = vmatprep.mubr.bf16.mxu0 %v1710_v30 }
 0x625   :  { %2584 = vmatmul.mubr.bf16.gmra.mrb[152].mxu0 %v1710_v30 }
 0x626   :  { %2585 = vmatprep.mubr.bf16.mxu0 %v1711_v26 }
 0x62d   :  { %2586 = vmatmul.mubr.bf16.gmra.mrb[156].mxu0 %v1711_v26 }
 0x62e   :  { %2844 = shalt.err (!%p2841_p4)
}
 0x62f   :  { %s2845_s25 = scalar_lea.hbm %s3557_s9, 4096 }
 0x630   :  { %p2846_p5 = scmp.ne.s32.totalorder %s3557_s9, %s2845_s25  ;;  %p2849_p6 = scmp.lt.u32.totalorder %s2845_s25, %s3557_s9 }
 0x632   :  { %p2851_p7 = pnand %p2849_p6, %p2846_p5 }
 0x634   :  { %2854 = shalt.err (!%p2851_p7)
}
 0x635   :  { %s2882_s3 = smov 128   ;;  %s2883_s29 = smov 8  }
 0x636   :  { %2045 = dma.vmem_to_hbm [thread:$0]  %s2040_s22, 4096, %s3557_s9, [#allocation6], %s2882_s3, %s2882_s3, %s2883_s29  }
 0x637   :  { %s2884_s9 = smov [#allocation3]  }
 0x638   :  { %s2027_s2 = sshll.u32 %s2884_s9, 4  ;;  %s2028_s2 = int_to_ptr.vmem [resolvable:$true] %s2027_s2 }
 0x639   :  { %s2855_s11 = scalar_lea.vmem %s2028_s2, 8192  ;;  %p2860_p9 = scmp.lt.s32.totalorder %s2028_s2, %s2028_s2 }
 0x63a   :  { %p2856_p8 = scmp.ne.s32.totalorder %s2028_s2, %s2855_s11  ;;  %p2861_p10 = scmp.lt.s32.totalorder %s2855_s11, %s2855_s11 }
 0x63c   :  { %p2862_p11 = por %p2861_p10, %p2860_p9 }
 0x63e   :  { %p2863_p12 = pnand %p2862_p11, %p2856_p8 }
 0x688   :  { %v1799_v31 = vpop.f32.mrb[96].mxu0 }
 0x689   :  { %1958 = vst [vmem:[#allocation3] sm:$0xff] %v1799_v31  ;;  %v1801_v40 = vpop.f32.mrb[97].mxu0 }
 0x68a   :  { %1959 = vst [vmem:[#allocation3 + $0x8] sm:$0xff] %v1801_v40  ;;  %v1803_v41 = vpop.f32.mrb[98].mxu0 }
 0x68b   :  { %1960 = vst [vmem:[#allocation3 + $0x10] sm:$0xff] %v1803_v41  ;;  %v1805_v56 = vpop.f32.mrb[99].mxu0 }
 0x68c   :  { %1961 = vst [vmem:[#allocation3 + $0x18] sm:$0xff] %v1805_v56 }
 0x690   :  { %v1809_v57 = vpop.f32.mrb[100].mxu0 }
 0x691   :  { %1962 = vst [vmem:[#allocation3 + $0x20] sm:$0xff] %v1809_v57  ;;  %v1811_v14 = vpop.f32.mrb[101].mxu0 }
 0x692   :  { %1963 = vst [vmem:[#allocation3 + $0x28] sm:$0xff] %v1811_v14  ;;  %v1813_v15 = vpop.f32.mrb[102].mxu0 }
 0x693   :  { %1964 = vst [vmem:[#allocation3 + $0x30] sm:$0xff] %v1813_v15  ;;  %v1815_v27 = vpop.f32.mrb[103].mxu0 }
 0x694   :  { %1965 = vst [vmem:[#allocation3 + $0x38] sm:$0xff] %v1815_v27 }
 0x698   :  { %v1819_v28 = vpop.f32.mrb[104].mxu0 }
 0x699   :  { %1966 = vst [vmem:[#allocation3 + $0x40] sm:$0xff] %v1819_v28  ;;  %v1821_v32 = vpop.f32.mrb[105].mxu0 }
 0x69a   :  { %1967 = vst [vmem:[#allocation3 + $0x48] sm:$0xff] %v1821_v32  ;;  %v1823_v33 = vpop.f32.mrb[106].mxu0 }
 0x69b   :  { %1968 = vst [vmem:[#allocation3 + $0x50] sm:$0xff] %v1823_v33  ;;  %v1825_v34 = vpop.f32.mrb[107].mxu0 }
 0x69c   :  { %1969 = vst [vmem:[#allocation3 + $0x58] sm:$0xff] %v1825_v34 }
 0x6a0   :  { %v1829_v37 = vpop.f32.mrb[108].mxu0 }
 0x6a1   :  { %1970 = vst [vmem:[#allocation3 + $0x60] sm:$0xff] %v1829_v37  ;;  %v1831_v63 = vpop.f32.mrb[109].mxu0 }
 0x6a2   :  { %1971 = vst [vmem:[#allocation3 + $0x68] sm:$0xff] %v1831_v63  ;;  %v1833_v29 = vpop.f32.mrb[110].mxu0 }
 0x6a3   :  { %1972 = vst [vmem:[#allocation3 + $0x70] sm:$0xff] %v1833_v29  ;;  %v1835_v0 = vpop.f32.mrb[111].mxu0 }
 0x6a4   :  { %1973 = vst [vmem:[#allocation3 + $0x78] sm:$0xff] %v1835_v0 }
 0x6a8   :  { %v1839_v3 = vpop.f32.mrb[112].mxu0 }
 0x6a9   :  { %1974 = vst [vmem:[#allocation3 + $0x80] sm:$0xff] %v1839_v3  ;;  %v1841_v4 = vpop.f32.mrb[113].mxu0 }
 0x6aa   :  { %1975 = vst [vmem:[#allocation3 + $0x88] sm:$0xff] %v1841_v4  ;;  %v1843_v12 = vpop.f32.mrb[114].mxu0 }
 0x6ab   :  { %1976 = vst [vmem:[#allocation3 + $0x90] sm:$0xff] %v1843_v12  ;;  %v1845_v35 = vpop.f32.mrb[115].mxu0 }
 0x6ac   :  { %1977 = vst [vmem:[#allocation3 + $0x98] sm:$0xff] %v1845_v35 }
 0x6b0   :  { %v1849_v60 = vpop.f32.mrb[116].mxu0 }
 0x6b1   :  { %1978 = vst [vmem:[#allocation3 + $0xa0] sm:$0xff] %v1849_v60  ;;  %v1851_v11 = vpop.f32.mrb[117].mxu0 }
 0x6b2   :  { %1979 = vst [vmem:[#allocation3 + $0xa8] sm:$0xff] %v1851_v11  ;;  %v1853_v42 = vpop.f32.mrb[118].mxu0 }
 0x6b3   :  { %1980 = vst [vmem:[#allocation3 + $0xb0] sm:$0xff] %v1853_v42  ;;  %v1855_v10 = vpop.f32.mrb[119].mxu0 }
 0x6b4   :  { %1981 = vst [vmem:[#allocation3 + $0xb8] sm:$0xff] %v1855_v10 }
 0x6b8   :  { %v1859_v36 = vpop.f32.mrb[120].mxu0 }
 0x6b9   :  { %1982 = vst [vmem:[#allocation3 + $0xc0] sm:$0xff] %v1859_v36  ;;  %v1861_v38 = vpop.f32.mrb[121].mxu0 }
 0x6ba   :  { %1983 = vst [vmem:[#allocation3 + $0xc8] sm:$0xff] %v1861_v38  ;;  %v1863_v39 = vpop.f32.mrb[122].mxu0 }
 0x6bb   :  { %1984 = vst [vmem:[#allocation3 + $0xd0] sm:$0xff] %v1863_v39  ;;  %v1865_v43 = vpop.f32.mrb[123].mxu0 }
 0x6bc   :  { %1985 = vst [vmem:[#allocation3 + $0xd8] sm:$0xff] %v1865_v43 }
 0x6c0   :  { %v1869_v44 = vpop.f32.mrb[124].mxu0 }
 0x6c1   :  { %1986 = vst [vmem:[#allocation3 + $0xe0] sm:$0xff] %v1869_v44  ;;  %v1871_v45 = vpop.f32.mrb[125].mxu0 }
 0x6c2   :  { %1987 = vst [vmem:[#allocation3 + $0xe8] sm:$0xff] %v1871_v45  ;;  %v1873_v46 = vpop.f32.mrb[126].mxu0 }
 0x6c3   :  { %1988 = vst [vmem:[#allocation3 + $0xf0] sm:$0xff] %v1873_v46  ;;  %v1875_v47 = vpop.f32.mrb[127].mxu0 }
 0x6c4   :  { %1989 = vst [vmem:[#allocation3 + $0xf8] sm:$0xff] %v1875_v47 }
 0x6c8   :  { %v1879_v49 = vpop.f32.mrb[128].mxu0 }
 0x6c9   :  { %1990 = vst [vmem:[#allocation3 + $0x100] sm:$0xff] %v1879_v49  ;;  %v1881_v50 = vpop.f32.mrb[129].mxu0 }
 0x6ca   :  { %1991 = vst [vmem:[#allocation3 + $0x108] sm:$0xff] %v1881_v50  ;;  %v1883_v51 = vpop.f32.mrb[130].mxu0 }
 0x6cb   :  { %1992 = vst [vmem:[#allocation3 + $0x110] sm:$0xff] %v1883_v51  ;;  %v1885_v52 = vpop.f32.mrb[131].mxu0 }
 0x6cc   :  { %1993 = vst [vmem:[#allocation3 + $0x118] sm:$0xff] %v1885_v52 }
 0x6d0   :  { %v1889_v53 = vpop.f32.mrb[132].mxu0 }
 0x6d1   :  { %1994 = vst [vmem:[#allocation3 + $0x120] sm:$0xff] %v1889_v53  ;;  %v1891_v54 = vpop.f32.mrb[133].mxu0 }
 0x6d2   :  { %1995 = vst [vmem:[#allocation3 + $0x128] sm:$0xff] %v1891_v54  ;;  %v1893_v55 = vpop.f32.mrb[134].mxu0 }
 0x6d3   :  { %1996 = vst [vmem:[#allocation3 + $0x130] sm:$0xff] %v1893_v55  ;;  %v1895_v58 = vpop.f32.mrb[135].mxu0 }
 0x6d4   :  { %1997 = vst [vmem:[#allocation3 + $0x138] sm:$0xff] %v1895_v58 }
 0x6d8   :  { %v1899_v59 = vpop.f32.mrb[136].mxu0 }
 0x6d9   :  { %1998 = vst [vmem:[#allocation3 + $0x140] sm:$0xff] %v1899_v59  ;;  %v1901_v61 = vpop.f32.mrb[137].mxu0 }
 0x6da   :  { %1999 = vst [vmem:[#allocation3 + $0x148] sm:$0xff] %v1901_v61  ;;  %v1903_v62 = vpop.f32.mrb[138].mxu0 }
 0x6db   :  { %2000 = vst [vmem:[#allocation3 + $0x150] sm:$0xff] %v1903_v62  ;;  %v1905_v1 = vpop.f32.mrb[139].mxu0 }
 0x6dc   :  { %2001 = vst [vmem:[#allocation3 + $0x158] sm:$0xff] %v1905_v1 }
 0x6e0   :  { %v1909_v2 = vpop.f32.mrb[140].mxu0 }
 0x6e1   :  { %2002 = vst [vmem:[#allocation3 + $0x160] sm:$0xff] %v1909_v2  ;;  %v1911_v5 = vpop.f32.mrb[141].mxu0 }
 0x6e2   :  { %2003 = vst [vmem:[#allocation3 + $0x168] sm:$0xff] %v1911_v5  ;;  %v1913_v6 = vpop.f32.mrb[142].mxu0 }
 0x6e3   :  { %2004 = vst [vmem:[#allocation3 + $0x170] sm:$0xff] %v1913_v6  ;;  %v1915_v7 = vpop.f32.mrb[143].mxu0 }
 0x6e4   :  { %2005 = vst [vmem:[#allocation3 + $0x178] sm:$0xff] %v1915_v7 }
 0x6e8   :  { %v1919_v8 = vpop.f32.mrb[144].mxu0 }
 0x6e9   :  { %2006 = vst [vmem:[#allocation3 + $0x180] sm:$0xff] %v1919_v8  ;;  %v1921_v9 = vpop.f32.mrb[145].mxu0 }
 0x6ea   :  { %2007 = vst [vmem:[#allocation3 + $0x188] sm:$0xff] %v1921_v9  ;;  %v1923_v13 = vpop.f32.mrb[146].mxu0 }
 0x6eb   :  { %2008 = vst [vmem:[#allocation3 + $0x190] sm:$0xff] %v1923_v13  ;;  %v1925_v16 = vpop.f32.mrb[147].mxu0 }
 0x6ec   :  { %2009 = vst [vmem:[#allocation3 + $0x198] sm:$0xff] %v1925_v16 }
 0x6f0   :  { %v1929_v17 = vpop.f32.mrb[148].mxu0 }
 0x6f1   :  { %2010 = vst [vmem:[#allocation3 + $0x1a0] sm:$0xff] %v1929_v17  ;;  %v1931_v18 = vpop.f32.mrb[149].mxu0 }
 0x6f2   :  { %2011 = vst [vmem:[#allocation3 + $0x1a8] sm:$0xff] %v1931_v18  ;;  %v1933_v19 = vpop.f32.mrb[150].mxu0 }
 0x6f3   :  { %2012 = vst [vmem:[#allocation3 + $0x1b0] sm:$0xff] %v1933_v19  ;;  %v1935_v20 = vpop.f32.mrb[151].mxu0 }
 0x6f4   :  { %2013 = vst [vmem:[#allocation3 + $0x1b8] sm:$0xff] %v1935_v20 }
 0x6f8   :  { %v1939_v21 = vpop.f32.mrb[152].mxu0 }
 0x6f9   :  { %2014 = vst [vmem:[#allocation3 + $0x1c0] sm:$0xff] %v1939_v21  ;;  %v1941_v22 = vpop.f32.mrb[153].mxu0 }
 0x6fa   :  { %2015 = vst [vmem:[#allocation3 + $0x1c8] sm:$0xff] %v1941_v22  ;;  %v1943_v48 = vpop.f32.mrb[154].mxu0 }
 0x6fb   :  { %2016 = vst [vmem:[#allocation3 + $0x1d0] sm:$0xff] %v1943_v48  ;;  %v1945_v23 = vpop.f32.mrb[155].mxu0 }
 0x6fc   :  { %2017 = vst [vmem:[#allocation3 + $0x1d8] sm:$0xff] %v1945_v23 }
 0x700   :  { %v1949_v24 = vpop.f32.mrb[156].mxu0 }
 0x701   :  { %2018 = vst [vmem:[#allocation3 + $0x1e0] sm:$0xff] %v1949_v24  ;;  %v1951_v25 = vpop.f32.mrb[157].mxu0 }
 0x702   :  { %2019 = vst [vmem:[#allocation3 + $0x1e8] sm:$0xff] %v1951_v25  ;;  %v1953_v26 = vpop.f32.mrb[158].mxu0 }
 0x703   :  { %2020 = vst [vmem:[#allocation3 + $0x1f0] sm:$0xff] %v1953_v26  ;;  %v1955_v30 = vpop.f32.mrb[159].mxu0 }
 0x704   :  { %2021 = vst [vmem:[#allocation3 + $0x1f8] sm:$0xff] %v1955_v30 }
 0x705   :  { %2866 = shalt.err (!%p2863_p12)
}
 0x706   :  { %s2867_s14 = scalar_lea.hbm %s3556_s8, 8192 }
 0x707   :  { %p2868_p13 = scmp.ne.s32.totalorder %s3556_s8, %s2867_s14  ;;  %p2871_p0 = scmp.lt.u32.totalorder %s2867_s14, %s3556_s8 }
 0x709   :  { %p2873_p1 = pnand %p2871_p0, %p2868_p13 }
 0x70b   :  { %2876 = shalt.err (!%p2873_p1)
}
 0x70c   :  { %s2885_s19 = smov 256   ;;  %s2886_s1 = smov 16  }
 0x70d   :  { %2033 = dma.vmem_to_hbm [thread:$0]  %s2028_s2, 8192, %s3556_s8, [#allocation4], %s2885_s19, %s2885_s19, %s2886_s1  }
 0x70e   :  { %2877 = dma.done.wait [#allocation4], 8192  }
 0x70f   :  { %2878 = vsyncadd [#allocation4], 4294959104 }
 0x710   :  { %2879 = dma.done.wait [#allocation6], 4096  }
 0x711   :  { %2880 = vsyncadd [#allocation6], 4294963200 }
 0x712   :  { %2052 = vsyncpa [#allocation4], 1 }
 0x713   :  { %2053 = vsyncpa [#allocation6], 1 }

</bundles_post_ra>
